<compile_context>
chip_gen: v6e
topology: v6e:2x2x1
jax: 0.10.0
libtpu: 0.0.40
codegen_flags: <defaults>
</compile_context>

<pallas_src>
import functools
import math

import jax
import jax.numpy as jnp
import numpy as np
from jax import lax
from jax.experimental import pallas as pl
from jax.experimental.pallas import tpu as pltpu

EPS = 1e-5


def _gelu_exact(x):
    # PyTorch nn.GELU() default = exact erf formulation.
    return 0.5 * x * (1.0 + jax.lax.erf(x * (1.0 / math.sqrt(2.0))))


def self_attention_kernel(
    x_ref,                      # [S, Cp]   (one batch; channels zero-padded to Cp)
    vecs_ref,                   # [8, Cp]   rows: ln1_g, ln1_b, bo, ln2_g, ln2_b, b1, b2, 0
    wqkv_ref, bqkv_ref,         # [Cp, Cqkv], [1, Cqkv]  (q|k|v packed on lanes)
    wo_ref,                     # [Cp, Cp]
    w1_ref,                     # [Cp, Cp]
    w2_ref,                     # [Cp, Cp]
    o_ref,                      # [S, Cp]
    *, num_heads, seq, channels,
):
    Cp = x_ref.shape[1]
    C = channels
    hd = C // num_heads
    inv_c = 1.0 / C

    ln1_g = vecs_ref[0:1, :]
    ln1_b = vecs_ref[1:2, :]
    bo    = vecs_ref[2:3, :]
    ln2_g = vecs_ref[3:4, :]
    ln2_b = vecs_ref[4:5, :]
    b1    = vecs_ref[5:6, :]
    b2    = vecs_ref[6:7, :]

    def layernorm(v, g, b):
        # Padded lanes of v are zero, so sum/C is the true mean and sum(v*v)/C the
        # true second moment over the real C channels; padded gamma/beta are zero,
        # which zeroes the padded output lanes.
        mu = jnp.sum(v, axis=-1, keepdims=True) * inv_c
        var = jnp.sum(v * v, axis=-1, keepdims=True) * inv_c - mu * mu
        return (v - mu) * jax.lax.rsqrt(var + EPS) * g + b

    # ---- LayerNorm + packed QKV projection (single MXU output tile) ----
    x_ln = layernorm(x_ref[...], ln1_g, ln1_b)
    qkv = jnp.dot(x_ln, wqkv_ref[...],
                  preferred_element_type=jnp.float32) + bqkv_ref[...]

    # ---- attention: heads accumulated straight into the output projection ----
    # TODO(synk): for larger S/C, batch the 4 heads' QK^T / PV into block-diagonal
    # 128-lane matmuls instead of 3 tiny contraction-depth-hd matmuls per head.
    acc = jnp.zeros((seq, Cp), jnp.float32)
    for h in range(num_heads):
        lo = h * hd
        qh = qkv[:, 0 * C + lo:0 * C + lo + hd]     # 1/sqrt(hd) already folded in
        kh = qkv[:, 1 * C + lo:1 * C + lo + hd]
        vh = qkv[:, 2 * C + lo:2 * C + lo + hd]
        s = lax.dot_general(qh, kh, (((1,), (1,)), ((), ())),
                            preferred_element_type=jnp.float32)      # [S, S]
        s = s - jnp.max(s, axis=-1, keepdims=True)
        p = jnp.exp(s)
        p = p / jnp.sum(p, axis=-1, keepdims=True)
        ho = jnp.dot(p, vh, preferred_element_type=jnp.float32)      # [S, hd]
        # Accumulate directly into the output projection (no lane concat);
        # wo_ref[lo:lo+hd, :] is an 8-sublane-aligned slice read per iteration.
        acc = acc + jnp.dot(ho, wo_ref[lo:lo + hd, :],
                            preferred_element_type=jnp.float32)

    # ---- first residual (local value, no output-ref staging) ----
    h1 = acc + bo + x_ref[...]

    # ---- feed-forward block: LN -> Linear -> GELU -> Linear -> residual ----
    h_ln = layernorm(h1, ln2_g, ln2_b)
    ff = jnp.dot(h_ln, w1_ref[...], preferred_element_type=jnp.float32) + b1
    ff = _gelu_exact(ff)
    ff = jnp.dot(ff, w2_ref[...], preferred_element_type=jnp.float32) + b2
    o_ref[...] = ff + h1


def self_attention_forward(x_nchw, params, num_heads=4):
    (ln1_g, ln1_b, wq, wk, wv, bq, bk, bv, wo, bo,
     ln2_g, ln2_b, w1, b1, w2, b2) = params
    B, C, H, W = x_nchw.shape
    assert C % num_heads == 0
    S = H * W
    hd = C // num_heads
    Cp = ((C + 127) // 128) * 128              # lane-dense padded channel dim
    Cqkv = ((3 * C + 127) // 128) * 128        # packed q|k|v lane width
    pad = Cp - C

    # NCHW -> flattened [B*S, C] token slab, zero-padded to Cp lanes.
    x_bsc = jnp.transpose(x_nchw.reshape(B, C, S), (0, 2, 1)).reshape(B * S, C)
    x_pad = jnp.pad(x_bsc, ((0, 0), (0, pad)))

    pad_mat = lambda w: jnp.pad(w, ((0, pad), (0, pad)))       # [C,C] -> [Cp,Cp]
    pad_row = lambda r: jnp.pad(r, ((0, 0), (0, pad)))         # [1,C] -> [1,Cp]

    # Fold the softmax 1/sqrt(hd) scale into the Q projection at trace time.
    scale = 1.0 / math.sqrt(hd)
    wqkv = jnp.pad(jnp.concatenate([wq * scale, wk, wv], axis=1),   # [C, 3C]
                   ((0, Cp - C), (0, Cqkv - 3 * C)))                # [Cp, Cqkv]
    bqkv = jnp.pad(jnp.concatenate([bq * scale, bk, bv], axis=1),
                   ((0, 0), (0, Cqkv - 3 * C)))                     # [1, Cqkv]

    # All [1, Cp] vectors packed into one [8, Cp] array (single DMA).
    vecs = jnp.concatenate(
        [pad_row(ln1_g), pad_row(ln1_b), pad_row(bo),
         pad_row(ln2_g), pad_row(ln2_b), pad_row(b1), pad_row(b2),
         jnp.zeros((1, Cp), jnp.float32)], axis=0)                  # [8, Cp]

    inputs = (x_pad, vecs, wqkv, bqkv, pad_mat(wo), pad_mat(w1), pad_mat(w2))

    flops = B * (2 * S * Cp * Cqkv                                   # packed QKV
                 + num_heads * (4 * S * S * hd + 2 * S * hd * Cp)    # attn + out proj
                 + 2 * (2 * S * Cp * Cp))                            # two FFN matmuls
    transcendentals = (B * num_heads * S * S       # exp
                       + B * S * Cp                # erf (GELU)
                       + 2 * B * S)                # rsqrt (two LayerNorms)
    bytes_accessed = 4 * (sum(int(a.size) for a in inputs) + B * S * Cp)

    # Per-batch grid: x / out tiled by batch; weights have constant index_maps so
    # they stay resident across grid steps.
    weight_spec = lambda shp: pl.BlockSpec(shp, lambda b: (0, 0))
    out_pad = pl.pallas_call(
        functools.partial(self_attention_kernel, num_heads=num_heads,
                          seq=S, channels=C),
        out_shape=jax.ShapeDtypeStruct((B * S, Cp), jnp.float32),
        grid=(B,),
        in_specs=[
            pl.BlockSpec((S, Cp), lambda b: (b, 0)),      # x (per-batch block)
            weight_spec((8, Cp)),                         # packed vectors
            weight_spec((Cp, Cqkv)),                      # wqkv
            weight_spec((1, Cqkv)),                       # bqkv
            weight_spec((Cp, Cp)),                        # wo
            weight_spec((Cp, Cp)),                        # w1
            weight_spec((Cp, Cp)),                        # w2
        ],
        out_specs=pl.BlockSpec((S, Cp), lambda b: (b, 0)),
        compiler_params=pltpu.CompilerParams(
            dimension_semantics=("parallel",)),
        cost_estimate=pl.CostEstimate(flops=flops,
                                      transcendentals=transcendentals,
                                      bytes_accessed=bytes_accessed),
    )(*inputs)

    # Strip channel padding, back to NCHW.
    out = out_pad[:, :C].reshape(B, S, C)
    return jnp.transpose(out, (0, 2, 1)).reshape(B, C, H, W)


def make_params(key, C):
    """Deterministic parameter init. All matrices stored as [in, out] so the
    kernel computes x @ W (equivalent to PyTorch's x @ W.T with W=[out,in])."""
    ks = jax.random.split(key, 12)
    s = 0.05
    ln1_g = jnp.ones((1, C), jnp.float32)
    ln1_b = jnp.zeros((1, C), jnp.float32)
    wq = s * jax.random.normal(ks[0], (C, C), jnp.float32)
    wk = s * jax.random.normal(ks[1], (C, C), jnp.float32)
    wv = s * jax.random.normal(ks[2], (C, C), jnp.float32)
    bq = s * jax.random.normal(ks[3], (1, C), jnp.float32)
    bk = s * jax.random.normal(ks[4], (1, C), jnp.float32)
    bv = s * jax.random.normal(ks[5], (1, C), jnp.float32)
    wo = s * jax.random.normal(ks[6], (C, C), jnp.float32)
    bo = s * jax.random.normal(ks[7], (1, C), jnp.float32)
    ln2_g = jnp.ones((1, C), jnp.float32)
    ln2_b = jnp.zeros((1, C), jnp.float32)
    w1 = s * jax.random.normal(ks[8], (C, C), jnp.float32)
    b1 = s * jax.random.normal(ks[9], (1, C), jnp.float32)
    w2 = s * jax.random.normal(ks[10], (C, C), jnp.float32)
    b2 = s * jax.random.normal(ks[11], (1, C), jnp.float32)
    return (ln1_g, ln1_b, wq, wk, wv, bq, bk, bv, wo, bo,
            ln2_g, ln2_b, w1, b1, w2, b2)


def _layernorm_ref(v, g, b):
    mu = jnp.mean(v, axis=-1, keepdims=True)
    var = jnp.mean((v - mu) ** 2, axis=-1, keepdims=True)
    return (v - mu) * jax.lax.rsqrt(var + EPS) * g + b


def reference_forward(x_nchw, params, num_heads=4):
    """Pure-JAX reference mirroring the (fixed) PyTorch forward."""
    (ln1_g, ln1_b, wq, wk, wv, bq, bk, bv, wo, bo,
     ln2_g, ln2_b, w1, b1, w2, b2) = params
    B, C, H, W = x_nchw.shape
    S = H * W
    hd = C // num_heads
    x = jnp.transpose(x_nchw.reshape(B, C, S), (0, 2, 1))          # [B,S,C]

    x_ln = _layernorm_ref(x, ln1_g, ln1_b)
    q = x_ln @ wq + bq
    k = x_ln @ wk + bk
    v = x_ln @ wv + bv
    qh = q.reshape(B, S, num_heads, hd).transpose(0, 2, 1, 3)
    kh = k.reshape(B, S, num_heads, hd).transpose(0, 2, 1, 3)
    vh = v.reshape(B, S, num_heads, hd).transpose(0, 2, 1, 3)
    scores = jnp.einsum("bhqd,bhkd->bhqk", qh, kh) / math.sqrt(hd)
    p = jax.nn.softmax(scores, axis=-1)
    attn = jnp.einsum("bhqk,bhkd->bhqd", p, vh).transpose(0, 2, 1, 3).reshape(B, S, C)
    attn = attn @ wo + bo
    h1 = attn + x
    ff = _layernorm_ref(h1, ln2_g, ln2_b) @ w1 + b1
    ff = _gelu_exact(ff)
    ff = ff @ w2 + b2
    out = ff + h1
    return jnp.transpose(out, (0, 2, 1)).reshape(B, C, H, W)


if __name__ == "__main__":
    # TODO(synk): source module uses nn.LinearNorm (nonexistent) and calls
    # self.mha(x_ln) with one arg; implemented the canonical intent:
    # LayerNorm + self-attention with q=k=v=x_ln.
    B, C, HW = 2, 32, 8           # in_channels=32 (4 heads x head_dim 8), size=8
    key = jax.random.PRNGKey(0)
    kx, kp = jax.random.split(key)
    x = jax.random.normal(kx, (B, C, HW, HW), jnp.float32)
    params = make_params(kp, C)

    fwd = jax.jit(self_attention_forward)
    out = jax.block_until_ready(fwd(x, params))

    ref = reference_forward(x, params)
    np.testing.assert_allclose(np.asarray(out), np.asarray(ref), atol=2e-4, rtol=2e-4)

    print("KERNEL_OK")
</pallas_src>

<mosaic_0001>
module attributes {stable_mosaic.version = 11 : i64} {
  func.func @self_attention_kernel(%arg0: i32, %arg1: memref<64x128xf32, #tpu.memory_space<vmem>>, %arg2: memref<8x128xf32, #tpu.memory_space<vmem>>, %arg3: memref<128x128xf32, #tpu.memory_space<vmem>>, %arg4: memref<1x128xf32, #tpu.memory_space<vmem>>, %arg5: memref<128x128xf32, #tpu.memory_space<vmem>>, %arg6: memref<128x128xf32, #tpu.memory_space<vmem>>, %arg7: memref<128x128xf32, #tpu.memory_space<vmem>>, %arg8: memref<64x128xf32, #tpu.memory_space<vmem>>) attributes {dimension_semantics = [#tpu.dimension_semantics<parallel>], iteration_bounds = array<i64: 2>, scalar_prefetch = 0 : i64, scratch_operands = 0 : i64, tpu.core_type = #tpu.core_type<tc>, window_params = [{transform_indices = @transform_0, window_bounds = array<i64: 64, 128>}, {pipeline_mode = #tpu.pipeline_mode<synchronous>, transform_indices = @transform_1, window_bounds = array<i64: 8, 128>}, {pipeline_mode = #tpu.pipeline_mode<synchronous>, transform_indices = @transform_2, window_bounds = array<i64: 128, 128>}, {pipeline_mode = #tpu.pipeline_mode<synchronous>, transform_indices = @transform_3, window_bounds = array<i64: 1, 128>}, {pipeline_mode = #tpu.pipeline_mode<synchronous>, transform_indices = @transform_4, window_bounds = array<i64: 128, 128>}, {pipeline_mode = #tpu.pipeline_mode<synchronous>, transform_indices = @transform_5, window_bounds = array<i64: 128, 128>}, {pipeline_mode = #tpu.pipeline_mode<synchronous>, transform_indices = @transform_6, window_bounds = array<i64: 128, 128>}, {transform_indices = @transform_7, window_bounds = array<i64: 64, 128>}]} {
    %c0 = arith.constant 0 : index
    %c0_0 = arith.constant 0 : index
    %0 = vector.load %arg2[%c0, %c0_0] : memref<8x128xf32, #tpu.memory_space<vmem>>, vector<1x128xf32>
    %c1 = arith.constant 1 : index
    %c0_1 = arith.constant 0 : index
    %1 = vector.load %arg2[%c1, %c0_1] : memref<8x128xf32, #tpu.memory_space<vmem>>, vector<1x128xf32>
    %c2 = arith.constant 2 : index
    %c0_2 = arith.constant 0 : index
    %2 = vector.load %arg2[%c2, %c0_2] : memref<8x128xf32, #tpu.memory_space<vmem>>, vector<1x128xf32>
    %c3 = arith.constant 3 : index
    %c0_3 = arith.constant 0 : index
    %3 = vector.load %arg2[%c3, %c0_3] : memref<8x128xf32, #tpu.memory_space<vmem>>, vector<1x128xf32>
    %c4 = arith.constant 4 : index
    %c0_4 = arith.constant 0 : index
    %4 = vector.load %arg2[%c4, %c0_4] : memref<8x128xf32, #tpu.memory_space<vmem>>, vector<1x128xf32>
    %c5 = arith.constant 5 : index
    %c0_5 = arith.constant 0 : index
    %5 = vector.load %arg2[%c5, %c0_5] : memref<8x128xf32, #tpu.memory_space<vmem>>, vector<1x128xf32>
    %c6 = arith.constant 6 : index
    %c0_6 = arith.constant 0 : index
    %6 = vector.load %arg2[%c6, %c0_6] : memref<8x128xf32, #tpu.memory_space<vmem>>, vector<1x128xf32>
    %c0_7 = arith.constant 0 : index
    %c0_8 = arith.constant 0 : index
    %7 = vector.load %arg1[%c0_7, %c0_8] : memref<64x128xf32, #tpu.memory_space<vmem>>, vector<64x128xf32>
    %cst = arith.constant dense<0.000000e+00> : vector<64xf32>
    %8 = vector.multi_reduction <add>, %7, %cst [1] : vector<64x128xf32> to vector<64xf32>
    %9 = vector.shape_cast %8 : vector<64xf32> to vector<64x1xf32>
    %cst_9 = arith.constant 3.125000e-02 : f32
    %10 = vector.broadcast %cst_9 : f32 to vector<64x1xf32>
    %11 = arith.mulf %9, %10 : vector<64x1xf32>
    %12 = arith.mulf %7, %7 : vector<64x128xf32>
    %cst_10 = arith.constant dense<0.000000e+00> : vector<64xf32>
    %13 = vector.multi_reduction <add>, %12, %cst_10 [1] : vector<64x128xf32> to vector<64xf32>
    %14 = vector.shape_cast %13 : vector<64xf32> to vector<64x1xf32>
    %cst_11 = arith.constant 3.125000e-02 : f32
    %15 = vector.broadcast %cst_11 : f32 to vector<64x1xf32>
    %16 = arith.mulf %14, %15 : vector<64x1xf32>
    %17 = arith.mulf %11, %11 : vector<64x1xf32>
    %18 = arith.subf %16, %17 : vector<64x1xf32>
    %19 = vector.broadcast %11 : vector<64x1xf32> to vector<64x128xf32>
    %20 = arith.subf %7, %19 : vector<64x128xf32>
    %cst_12 = arith.constant 9.99999974E-6 : f32
    %21 = vector.broadcast %cst_12 : f32 to vector<64x1xf32>
    %22 = arith.addf %18, %21 : vector<64x1xf32>
    %23 = math.rsqrt %22 : vector<64x1xf32>
    %24 = vector.broadcast %23 : vector<64x1xf32> to vector<64x128xf32>
    %25 = arith.mulf %20, %24 : vector<64x128xf32>
    %26 = vector.broadcast %0 : vector<1x128xf32> to vector<64x128xf32>
    %27 = arith.mulf %25, %26 : vector<64x128xf32>
    %28 = vector.broadcast %1 : vector<1x128xf32> to vector<64x128xf32>
    %29 = arith.addf %27, %28 : vector<64x128xf32>
    %c0_13 = arith.constant 0 : index
    %c0_14 = arith.constant 0 : index
    %30 = vector.load %arg3[%c0_13, %c0_14] : memref<128x128xf32, #tpu.memory_space<vmem>>, vector<128x128xf32>
    %cst_15 = arith.constant dense<0.000000e+00> : vector<64x128xf32>
    %31 = tpu.matmul %29, %30, %cst_15 {dimension_numbers = #tpu.dot_dimension_numbers<[1], [0], [0], [1], [0, 0, 1, 1], [], []>} : vector<64x128xf32>, vector<128x128xf32>, vector<64x128xf32> -> vector<64x128xf32>
    %c0_16 = arith.constant 0 : index
    %c0_17 = arith.constant 0 : index
    %32 = vector.load %arg4[%c0_16, %c0_17] : memref<1x128xf32, #tpu.memory_space<vmem>>, vector<1x128xf32>
    %33 = vector.broadcast %32 : vector<1x128xf32> to vector<64x128xf32>
    %34 = arith.addf %31, %33 : vector<64x128xf32>
    %cst_18 = arith.constant 0.000000e+00 : f32
    %35 = vector.broadcast %cst_18 : f32 to vector<64x128xf32>
    %36 = vector.extract_strided_slice %34 {offsets = [0, 0], sizes = [64, 8], strides = [1, 1]} : vector<64x128xf32> to vector<64x8xf32>
    %37 = vector.extract_strided_slice %34 {offsets = [0, 32], sizes = [64, 8], strides = [1, 1]} : vector<64x128xf32> to vector<64x8xf32>
    %38 = vector.extract_strided_slice %34 {offsets = [0, 64], sizes = [64, 8], strides = [1, 1]} : vector<64x128xf32> to vector<64x8xf32>
    %cst_19 = arith.constant dense<0.000000e+00> : vector<64x64xf32>
    %39 = tpu.matmul %36, %37, %cst_19 {dimension_numbers = #tpu.dot_dimension_numbers<[1], [1], [0], [0], [0, 0, 1, 0], [], []>} : vector<64x8xf32>, vector<64x8xf32>, vector<64x64xf32> -> vector<64x64xf32>
    %cst_20 = arith.constant dense<0xFF800000> : vector<64xf32>
    %40 = vector.multi_reduction <maximumf>, %39, %cst_20 [1] : vector<64x64xf32> to vector<64xf32>
    %41 = vector.shape_cast %40 : vector<64xf32> to vector<64x1xf32>
    %42 = vector.broadcast %41 : vector<64x1xf32> to vector<64x64xf32>
    %43 = arith.subf %39, %42 : vector<64x64xf32>
    %44 = math.exp %43 : vector<64x64xf32>
    %cst_21 = arith.constant dense<0.000000e+00> : vector<64xf32>
    %45 = vector.multi_reduction <add>, %44, %cst_21 [1] : vector<64x64xf32> to vector<64xf32>
    %46 = vector.shape_cast %45 : vector<64xf32> to vector<64x1xf32>
    %47 = vector.broadcast %46 : vector<64x1xf32> to vector<64x64xf32>
    %48 = arith.divf %44, %47 : vector<64x64xf32>
    %cst_22 = arith.constant dense<0.000000e+00> : vector<64x8xf32>
    %49 = tpu.matmul %48, %38, %cst_22 {dimension_numbers = #tpu.dot_dimension_numbers<[1], [0], [0], [1], [0, 0, 1, 1], [], []>} : vector<64x64xf32>, vector<64x8xf32>, vector<64x8xf32> -> vector<64x8xf32>
    %c0_23 = arith.constant 0 : index
    %c0_24 = arith.constant 0 : index
    %50 = vector.load %arg5[%c0_23, %c0_24] : memref<128x128xf32, #tpu.memory_space<vmem>>, vector<8x128xf32>
    %cst_25 = arith.constant dense<0.000000e+00> : vector<64x128xf32>
    %51 = tpu.matmul %49, %50, %cst_25 {dimension_numbers = #tpu.dot_dimension_numbers<[1], [0], [0], [1], [0, 0, 1, 1], [], []>} : vector<64x8xf32>, vector<8x128xf32>, vector<64x128xf32> -> vector<64x128xf32>
    %52 = arith.addf %35, %51 : vector<64x128xf32>
    %53 = vector.extract_strided_slice %34 {offsets = [0, 8], sizes = [64, 8], strides = [1, 1]} : vector<64x128xf32> to vector<64x8xf32>
    %54 = vector.extract_strided_slice %34 {offsets = [0, 40], sizes = [64, 8], strides = [1, 1]} : vector<64x128xf32> to vector<64x8xf32>
    %55 = vector.extract_strided_slice %34 {offsets = [0, 72], sizes = [64, 8], strides = [1, 1]} : vector<64x128xf32> to vector<64x8xf32>
    %cst_26 = arith.constant dense<0.000000e+00> : vector<64x64xf32>
    %56 = tpu.matmul %53, %54, %cst_26 {dimension_numbers = #tpu.dot_dimension_numbers<[1], [1], [0], [0], [0, 0, 1, 0], [], []>} : vector<64x8xf32>, vector<64x8xf32>, vector<64x64xf32> -> vector<64x64xf32>
    %cst_27 = arith.constant dense<0xFF800000> : vector<64xf32>
    %57 = vector.multi_reduction <maximumf>, %56, %cst_27 [1] : vector<64x64xf32> to vector<64xf32>
    %58 = vector.shape_cast %57 : vector<64xf32> to vector<64x1xf32>
    %59 = vector.broadcast %58 : vector<64x1xf32> to vector<64x64xf32>
    %60 = arith.subf %56, %59 : vector<64x64xf32>
    %61 = math.exp %60 : vector<64x64xf32>
    %cst_28 = arith.constant dense<0.000000e+00> : vector<64xf32>
    %62 = vector.multi_reduction <add>, %61, %cst_28 [1] : vector<64x64xf32> to vector<64xf32>
    %63 = vector.shape_cast %62 : vector<64xf32> to vector<64x1xf32>
    %64 = vector.broadcast %63 : vector<64x1xf32> to vector<64x64xf32>
    %65 = arith.divf %61, %64 : vector<64x64xf32>
    %cst_29 = arith.constant dense<0.000000e+00> : vector<64x8xf32>
    %66 = tpu.matmul %65, %55, %cst_29 {dimension_numbers = #tpu.dot_dimension_numbers<[1], [0], [0], [1], [0, 0, 1, 1], [], []>} : vector<64x64xf32>, vector<64x8xf32>, vector<64x8xf32> -> vector<64x8xf32>
    %c8 = arith.constant 8 : index
    %c0_30 = arith.constant 0 : index
    %67 = vector.load %arg5[%c8, %c0_30] : memref<128x128xf32, #tpu.memory_space<vmem>>, vector<8x128xf32>
    %cst_31 = arith.constant dense<0.000000e+00> : vector<64x128xf32>
    %68 = tpu.matmul %66, %67, %cst_31 {dimension_numbers = #tpu.dot_dimension_numbers<[1], [0], [0], [1], [0, 0, 1, 1], [], []>} : vector<64x8xf32>, vector<8x128xf32>, vector<64x128xf32> -> vector<64x128xf32>
    %69 = arith.addf %52, %68 : vector<64x128xf32>
    %70 = vector.extract_strided_slice %34 {offsets = [0, 16], sizes = [64, 8], strides = [1, 1]} : vector<64x128xf32> to vector<64x8xf32>
    %71 = vector.extract_strided_slice %34 {offsets = [0, 48], sizes = [64, 8], strides = [1, 1]} : vector<64x128xf32> to vector<64x8xf32>
    %72 = vector.extract_strided_slice %34 {offsets = [0, 80], sizes = [64, 8], strides = [1, 1]} : vector<64x128xf32> to vector<64x8xf32>
    %cst_32 = arith.constant dense<0.000000e+00> : vector<64x64xf32>
    %73 = tpu.matmul %70, %71, %cst_32 {dimension_numbers = #tpu.dot_dimension_numbers<[1], [1], [0], [0], [0, 0, 1, 0], [], []>} : vector<64x8xf32>, vector<64x8xf32>, vector<64x64xf32> -> vector<64x64xf32>
    %cst_33 = arith.constant dense<0xFF800000> : vector<64xf32>
    %74 = vector.multi_reduction <maximumf>, %73, %cst_33 [1] : vector<64x64xf32> to vector<64xf32>
    %75 = vector.shape_cast %74 : vector<64xf32> to vector<64x1xf32>
    %76 = vector.broadcast %75 : vector<64x1xf32> to vector<64x64xf32>
    %77 = arith.subf %73, %76 : vector<64x64xf32>
    %78 = math.exp %77 : vector<64x64xf32>
    %cst_34 = arith.constant dense<0.000000e+00> : vector<64xf32>
    %79 = vector.multi_reduction <add>, %78, %cst_34 [1] : vector<64x64xf32> to vector<64xf32>
    %80 = vector.shape_cast %79 : vector<64xf32> to vector<64x1xf32>
    %81 = vector.broadcast %80 : vector<64x1xf32> to vector<64x64xf32>
    %82 = arith.divf %78, %81 : vector<64x64xf32>
    %cst_35 = arith.constant dense<0.000000e+00> : vector<64x8xf32>
    %83 = tpu.matmul %82, %72, %cst_35 {dimension_numbers = #tpu.dot_dimension_numbers<[1], [0], [0], [1], [0, 0, 1, 1], [], []>} : vector<64x64xf32>, vector<64x8xf32>, vector<64x8xf32> -> vector<64x8xf32>
    %c16 = arith.constant 16 : index
    %c0_36 = arith.constant 0 : index
    %84 = vector.load %arg5[%c16, %c0_36] : memref<128x128xf32, #tpu.memory_space<vmem>>, vector<8x128xf32>
    %cst_37 = arith.constant dense<0.000000e+00> : vector<64x128xf32>
    %85 = tpu.matmul %83, %84, %cst_37 {dimension_numbers = #tpu.dot_dimension_numbers<[1], [0], [0], [1], [0, 0, 1, 1], [], []>} : vector<64x8xf32>, vector<8x128xf32>, vector<64x128xf32> -> vector<64x128xf32>
    %86 = arith.addf %69, %85 : vector<64x128xf32>
    %87 = vector.extract_strided_slice %34 {offsets = [0, 24], sizes = [64, 8], strides = [1, 1]} : vector<64x128xf32> to vector<64x8xf32>
    %88 = vector.extract_strided_slice %34 {offsets = [0, 56], sizes = [64, 8], strides = [1, 1]} : vector<64x128xf32> to vector<64x8xf32>
    %89 = vector.extract_strided_slice %34 {offsets = [0, 88], sizes = [64, 8], strides = [1, 1]} : vector<64x128xf32> to vector<64x8xf32>
    %cst_38 = arith.constant dense<0.000000e+00> : vector<64x64xf32>
    %90 = tpu.matmul %87, %88, %cst_38 {dimension_numbers = #tpu.dot_dimension_numbers<[1], [1], [0], [0], [0, 0, 1, 0], [], []>} : vector<64x8xf32>, vector<64x8xf32>, vector<64x64xf32> -> vector<64x64xf32>
    %cst_39 = arith.constant dense<0xFF800000> : vector<64xf32>
    %91 = vector.multi_reduction <maximumf>, %90, %cst_39 [1] : vector<64x64xf32> to vector<64xf32>
    %92 = vector.shape_cast %91 : vector<64xf32> to vector<64x1xf32>
    %93 = vector.broadcast %92 : vector<64x1xf32> to vector<64x64xf32>
    %94 = arith.subf %90, %93 : vector<64x64xf32>
    %95 = math.exp %94 : vector<64x64xf32>
    %cst_40 = arith.constant dense<0.000000e+00> : vector<64xf32>
    %96 = vector.multi_reduction <add>, %95, %cst_40 [1] : vector<64x64xf32> to vector<64xf32>
    %97 = vector.shape_cast %96 : vector<64xf32> to vector<64x1xf32>
    %98 = vector.broadcast %97 : vector<64x1xf32> to vector<64x64xf32>
    %99 = arith.divf %95, %98 : vector<64x64xf32>
    %cst_41 = arith.constant dense<0.000000e+00> : vector<64x8xf32>
    %100 = tpu.matmul %99, %89, %cst_41 {dimension_numbers = #tpu.dot_dimension_numbers<[1], [0], [0], [1], [0, 0, 1, 1], [], []>} : vector<64x64xf32>, vector<64x8xf32>, vector<64x8xf32> -> vector<64x8xf32>
    %c24 = arith.constant 24 : index
    %c0_42 = arith.constant 0 : index
    %101 = vector.load %arg5[%c24, %c0_42] : memref<128x128xf32, #tpu.memory_space<vmem>>, vector<8x128xf32>
    %cst_43 = arith.constant dense<0.000000e+00> : vector<64x128xf32>
    %102 = tpu.matmul %100, %101, %cst_43 {dimension_numbers = #tpu.dot_dimension_numbers<[1], [0], [0], [1], [0, 0, 1, 1], [], []>} : vector<64x8xf32>, vector<8x128xf32>, vector<64x128xf32> -> vector<64x128xf32>
    %103 = arith.addf %86, %102 : vector<64x128xf32>
    %104 = vector.broadcast %2 : vector<1x128xf32> to vector<64x128xf32>
    %105 = arith.addf %103, %104 : vector<64x128xf32>
    %c0_44 = arith.constant 0 : index
    %c0_45 = arith.constant 0 : index
    %106 = vector.load %arg1[%c0_44, %c0_45] : memref<64x128xf32, #tpu.memory_space<vmem>>, vector<64x128xf32>
    %107 = arith.addf %105, %106 : vector<64x128xf32>
    %cst_46 = arith.constant dense<0.000000e+00> : vector<64xf32>
    %108 = vector.multi_reduction <add>, %107, %cst_46 [1] : vector<64x128xf32> to vector<64xf32>
    %109 = vector.shape_cast %108 : vector<64xf32> to vector<64x1xf32>
    %cst_47 = arith.constant 3.125000e-02 : f32
    %110 = vector.broadcast %cst_47 : f32 to vector<64x1xf32>
    %111 = arith.mulf %109, %110 : vector<64x1xf32>
    %112 = arith.mulf %107, %107 : vector<64x128xf32>
    %cst_48 = arith.constant dense<0.000000e+00> : vector<64xf32>
    %113 = vector.multi_reduction <add>, %112, %cst_48 [1] : vector<64x128xf32> to vector<64xf32>
    %114 = vector.shape_cast %113 : vector<64xf32> to vector<64x1xf32>
    %cst_49 = arith.constant 3.125000e-02 : f32
    %115 = vector.broadcast %cst_49 : f32 to vector<64x1xf32>
    %116 = arith.mulf %114, %115 : vector<64x1xf32>
    %117 = arith.mulf %111, %111 : vector<64x1xf32>
    %118 = arith.subf %116, %117 : vector<64x1xf32>
    %119 = vector.broadcast %111 : vector<64x1xf32> to vector<64x128xf32>
    %120 = arith.subf %107, %119 : vector<64x128xf32>
    %cst_50 = arith.constant 9.99999974E-6 : f32
    %121 = vector.broadcast %cst_50 : f32 to vector<64x1xf32>
    %122 = arith.addf %118, %121 : vector<64x1xf32>
    %123 = math.rsqrt %122 : vector<64x1xf32>
    %124 = vector.broadcast %123 : vector<64x1xf32> to vector<64x128xf32>
    %125 = arith.mulf %120, %124 : vector<64x128xf32>
    %126 = vector.broadcast %3 : vector<1x128xf32> to vector<64x128xf32>
    %127 = arith.mulf %125, %126 : vector<64x128xf32>
    %128 = vector.broadcast %4 : vector<1x128xf32> to vector<64x128xf32>
    %129 = arith.addf %127, %128 : vector<64x128xf32>
    %c0_51 = arith.constant 0 : index
    %c0_52 = arith.constant 0 : index
    %130 = vector.load %arg6[%c0_51, %c0_52] : memref<128x128xf32, #tpu.memory_space<vmem>>, vector<128x128xf32>
    %cst_53 = arith.constant dense<0.000000e+00> : vector<64x128xf32>
    %131 = tpu.matmul %129, %130, %cst_53 {dimension_numbers = #tpu.dot_dimension_numbers<[1], [0], [0], [1], [0, 0, 1, 1], [], []>} : vector<64x128xf32>, vector<128x128xf32>, vector<64x128xf32> -> vector<64x128xf32>
    %132 = vector.broadcast %5 : vector<1x128xf32> to vector<64x128xf32>
    %133 = arith.addf %131, %132 : vector<64x128xf32>
    %cst_54 = arith.constant 5.000000e-01 : f32
    %134 = vector.broadcast %cst_54 : f32 to vector<64x128xf32>
    %135 = arith.mulf %134, %133 : vector<64x128xf32>
    %cst_55 = arith.constant 0.707106769 : f32
    %136 = vector.broadcast %cst_55 : f32 to vector<64x128xf32>
    %137 = arith.mulf %133, %136 : vector<64x128xf32>
    %138 = math.erf %137 : vector<64x128xf32>
    %cst_56 = arith.constant 1.000000e+00 : f32
    %139 = vector.broadcast %cst_56 : f32 to vector<64x128xf32>
    %140 = arith.addf %139, %138 : vector<64x128xf32>
    %141 = arith.mulf %135, %140 : vector<64x128xf32>
    %c0_57 = arith.constant 0 : index
    %c0_58 = arith.constant 0 : index
    %142 = vector.load %arg7[%c0_57, %c0_58] : memref<128x128xf32, #tpu.memory_space<vmem>>, vector<128x128xf32>
    %cst_59 = arith.constant dense<0.000000e+00> : vector<64x128xf32>
    %143 = tpu.matmul %141, %142, %cst_59 {dimension_numbers = #tpu.dot_dimension_numbers<[1], [0], [0], [1], [0, 0, 1, 1], [], []>} : vector<64x128xf32>, vector<128x128xf32>, vector<64x128xf32> -> vector<64x128xf32>
    %144 = vector.broadcast %6 : vector<1x128xf32> to vector<64x128xf32>
    %145 = arith.addf %143, %144 : vector<64x128xf32>
    %146 = arith.addf %145, %107 : vector<64x128xf32>
    %c0_60 = arith.constant 0 : index
    %c0_61 = arith.constant 0 : index
    %147 = vector.load %arg8[%c0_60, %c0_61] : memref<64x128xf32, #tpu.memory_space<vmem>>, vector<64x128xf32>
    tpu.vector_store %arg8[%c0_60, %c0_61], %146 {strides = array<i32>} : memref<64x128xf32, #tpu.memory_space<vmem>>, vector<64x128xf32>,
    return
  }
  func.func @transform_0(%arg0: i32) -> (i32, i32) {
    %c0_i32 = arith.constant 0 : i32
    %c0_i32_0 = arith.constant 0 : i32
    return %arg0, %c0_i32 : i32, i32
  }
  func.func @transform_1(%arg0: i32) -> (i32, i32) {
    %c0_i32 = arith.constant 0 : i32
    %c0_i32_0 = arith.constant 0 : i32
    %c0_i32_1 = arith.constant 0 : i32
    return %c0_i32, %c0_i32_0 : i32, i32
  }
  func.func @transform_2(%arg0: i32) -> (i32, i32) {
    %c0_i32 = arith.constant 0 : i32
    %c0_i32_0 = arith.constant 0 : i32
    %c0_i32_1 = arith.constant 0 : i32
    return %c0_i32, %c0_i32_0 : i32, i32
  }
  func.func @transform_3(%arg0: i32) -> (i32, i32) {
    %c0_i32 = arith.constant 0 : i32
    %c0_i32_0 = arith.constant 0 : i32
    %c0_i32_1 = arith.constant 0 : i32
    return %c0_i32, %c0_i32_0 : i32, i32
  }
  func.func @transform_4(%arg0: i32) -> (i32, i32) {
    %c0_i32 = arith.constant 0 : i32
    %c0_i32_0 = arith.constant 0 : i32
    %c0_i32_1 = arith.constant 0 : i32
    return %c0_i32, %c0_i32_0 : i32, i32
  }
  func.func @transform_5(%arg0: i32) -> (i32, i32) {
    %c0_i32 = arith.constant 0 : i32
    %c0_i32_0 = arith.constant 0 : i32
    %c0_i32_1 = arith.constant 0 : i32
    return %c0_i32, %c0_i32_0 : i32, i32
  }
  func.func @transform_6(%arg0: i32) -> (i32, i32) {
    %c0_i32 = arith.constant 0 : i32
    %c0_i32_0 = arith.constant 0 : i32
    %c0_i32_1 = arith.constant 0 : i32
    return %c0_i32, %c0_i32_0 : i32, i32
  }
  func.func @transform_7(%arg0: i32) -> (i32, i32) {
    %c0_i32 = arith.constant 0 : i32
    %c0_i32_0 = arith.constant 0 : i32
    return %arg0, %c0_i32 : i32, i32
  }
}

</mosaic_0001>

<bundles_post_ra>
// kernel: self_attention_forward.1
= control target key start
LH: loop header
LB: loop body
LE: loop exit
PB: predicated region body
PF: predicated region fallthrough
CT: control target
= control target key end

     0   :  { %12 = vsyncpa [#allocation3], 0  ;;  %s5502_s0 = inlined_call_operand.vmem [shape: f32[128,128], index: 0, kind: input, shape index: {}]   ;;  %s5503_s1 = inlined_call_operand.vmem [shape: f32[8,128], index: 1, kind: input, shape index: {}]   ;;  %s5504_s2 = inlined_call_operand.vmem [shape: f32[128,128], index: 2, kind: input, shape index: {}]   ;;  %s5505_s3 = inlined_call_operand.vmem [shape: f32[1,128], index: 3, kind: input, shape index: {}]   ;;  %s5506_s4 = inlined_call_operand.vmem [shape: f32[128,128], index: 4, kind: input, shape index: {}]   ;;  %s5507_s5 = inlined_call_operand.vmem [shape: f32[128,128], index: 5, kind: input, shape index: {}]   ;;  %s5508_s6 = inlined_call_operand.vmem [shape: f32[128,128], index: 6, kind: input, shape index: {}]   ;;  %s5509_s7 = inlined_call_operand.hbm [shape: f32[128,128], index: 7, kind: output, shape index: {}]  }
   0x1   :  { %14 = vsyncpa [#allocation3 + $0x1], 0  ;;  %s4400_s24 = smov 0   ;;  %s4402_s25 = smov 0  }
   0x2   :  { %s4404_s26 = smov 0   ;;  %s4406_s27 = smov 0  }
   0x3 LB: > { %s4421_s28 = sadd.s32 4294967295, %s4344_s27   ;;  %s3251_s29 = sadd.s32 4294967294, %s4344_s27   ;;  %s4344_s27 = sphi %s4406_s27, %s5515_s27   ;;  %s4340_s26 = sphi %s4404_s26, %s5514_s26   ;;  %s4336_s25 = sphi %s4402_s25, %s5513_s25   ;;  %s4332_s24 = sphi %s4400_s24, %s5512_s24  }
   0x4   : > { %s4425_s30 = sadd.s32 1, %s4344_s27   ;;  %s179_s8 = sadd.s32 1, %s4340_s26 }
   0x5   : > { %s176_s9 = ssub.s32 %s4344_s27, %s4425_s30  ;;  %p189_p0 = scmp.ne.s32.totalorder %s4340_s26, %s4336_s25 }
   0x6   : > { %p177_p1 = scmp.eq.s32.totalorder %s176_s9, 0  ;;  %p190_p2 = scmp.eq.s32.totalorder %s4421_s28, 1 }
   0x7   : > { %p195_p3 = scmp.ne.s32.totalorder %s4336_s25, %s4332_s24  ;;  %p196_p4 = scmp.eq.s32.totalorder %s3251_s29, 1 }
   0x8   : > { %s4436_s10 = scalar_select %p177_p1, %s4340_s26, %s179_s8  }
   0x9   : > { %p4438_p5 = por %p190_p2, %p189_p0  ;;  %p4442_p6 = por %p196_p4, %p195_p3 }
   0xa   : > { %p3254_p7 = scmp.ge.s32.totalorder %s4344_s27, 1  ;;  %p241_p8 = scmp.lt.s32.totalorder %s4344_s27, 3 }
   0xc   : > { %p242_p9 = pnand %p3254_p7, %p241_p8 }
   0xd   : > { %s3256_s13 = sshll.u32 (!%p242_p9), %s4421_s28, 3  ;;  %s4346_s16 = smov (!%p242_p9), 96  }
   0xe   : > { %245 = sbr.rel (%p242_p9) target bundleno = 3150 (0xc4e), region = 48  ;;  %p274_p10 = scmp.lt.s32.totalorder (!%p242_p9), %s3256_s13, 15 }
   0xf   : > { %s4347_s18 = smov (!%p242_p9), 88   ;;  %s4348_s19 = smov (!%p242_p9), 120  }
  0x10   : > { %s4349_s20 = smov (!%p242_p9), 64   ;;  %s4350_s21 = smov (!%p242_p9), 56  }
  0x11   : > { %s4351_s22 = smov (!%p242_p9), 80   ;;  %s4352_s23 = smov (!%p242_p9), 112  }
  0x12   : > { %s4353_s29 = smov (!%p242_p9), 72   ;;  %s4354_s8 = smov (!%p242_p9), 104  }
  0x13   : > { %s5517_s13 = smov (!%p274_p10, %s3256_s13), 15  ;;  %v438_v8 = vld [vmem:[%s5504_s2 + $0x78] sm:$0xff]  ;;  %v437_v11 = vld [vmem:[%s5504_s2 + $0x70] sm:$0xff]  ;;  %v436_v12 = vld [vmem:[%s5504_s2 + $0x68] sm:$0xff]  ;;  %vm575_vm0 = vcmask 64512   ;;  %vm713_vm1 = vcmask 523264  }
  0x14   : > { %s3257_s14 = sshll.u32 %s5517_s13, 3  ;;  %3636 = vmatprep.subr.mxu0 %v438_v8  ;;  %v435_v15 = vld [vmem:[%s5504_s2 + $0x60] sm:$0xff]  ;;  %v434_v16 = vld [vmem:[%s5504_s2 + $0x58] sm:$0xff]  ;;  %v433_v19 = vld [vmem:[%s5504_s2 + $0x50] sm:$0xff]  ;;  %s270_s9 = sand.u32 1, %s4336_s25  }
  0x15   : > { %s4452_s17 = scalar_lea.vmem %s5502_s0, %s3257_s14  ;;  %3637 = vmatpush3.msra.mxu0 %v438_v8  ;;  %v432_v22 = vld [vmem:[%s5504_s2 + $0x48] sm:$0xff]  ;;  %v431_v23 = vld [vmem:[%s5504_s2 + $0x40] sm:$0xff]  ;;  %v430_v24 = vld [vmem:[%s5504_s2 + $0x38] sm:$0xff]  ;;  %s3255_s15 = sshll.u32 %s270_s9, 6 }
  0x16   : > { %v4455_v0 = vld [vmem:[%s4452_s17 + $0x18] sm:$0xff]  ;;  %v4458_v1 = vld [vmem:[%s4452_s17] sm:$0xff]  ;;  %v4465_v3 = vld [vmem:[%s4452_s17 + $0x8] sm:$0xff]  ;;  %3638 = vmatprep.subr.mxu0 %v437_v11 }
  0x17   : > { %301 = vadd.xlane.f32.xlu1 %v4455_v0  ;;  %295 = vadd.xlane.f32.xlu0 %v4458_v1  ;;  %v319_v2 = vmul.f32 %v4458_v1, %v4458_v1  ;;  %v320_v4 = vmul.f32 %v4465_v3, %v4465_v3  ;;  %v4471_v5 = vld [vmem:[%s4452_s17 + $0x10] sm:$0xff]  ;;  %v322_v7 = vmul.f32 %v4455_v0, %v4455_v0  ;;  %v4482_v9 = vld [vmem:[%s4452_s17 + $0x20] sm:$0xff]  ;;  %v4485_v10 = vld [vmem:[%s4452_s17 + $0x28] sm:$0xff] }
  0x18   : > { %v321_v6 = vmul.f32 %v4471_v5, %v4471_v5  ;;  %v323_v13 = vmul.f32 %v4482_v9, %v4482_v9  ;;  %v324_v14 = vmul.f32 %v4485_v10, %v4485_v10  ;;  %3639 = vmatpush3.msra.mxu0 %v437_v11  ;;  %v4506_v17 = vld [vmem:[%s4452_s17 + $0x30] sm:$0xff]  ;;  %v4509_v18 = vld [vmem:[%s4452_s17 + $0x38] sm:$0xff]  ;;  %v428_v26 = vld [vmem:[%s5504_s2 + $0x28] sm:$0xff] }
  0x19   : > { %3640 = vmatprep.subr.mxu0 %v436_v12  ;;  %v325_v20 = vmul.f32 %v4506_v17, %v4506_v17  ;;  %v326_v21 = vmul.f32 %v4509_v18, %v4509_v18  ;;  %v429_v25 = vld [vmem:[%s5504_s2 + $0x30] sm:$0xff]  ;;  %v427_v27 = vld [vmem:[%s5504_s2 + $0x20] sm:$0xff]  ;;  %v426_v28 = vld [vmem:[%s5504_s2 + $0x18] sm:$0xff] }
  0x1a   : > { %3641 = vmatpush3.msra.mxu0 %v436_v12  ;;  %v425_v29 = vld [vmem:[%s5504_s2 + $0x10] sm:$0xff]  ;;  %v424_v30 = vld [vmem:[%s5504_s2 + $0x8] sm:$0xff]  ;;  %v423_v31 = vld [vmem:[%s5504_s2] sm:$0xff] }
  0x1b   : > { %297 = vadd.xlane.f32.xlu0 %v4465_v3  ;;  %327 = vadd.xlane.f32.xlu1 %v319_v2 }
  0x1c   : > { %3642 = vmatprep.subr.mxu0 %v435_v15 }
  0x1d   : > { %3643 = vmatpush3.msra.mxu0 %v435_v15 }
  0x1e   : > { %3644 = vmatprep.subr.mxu0 %v434_v16 }
  0x1f   : > { %299 = vadd.xlane.f32.xlu0 %v4471_v5  ;;  %329 = vadd.xlane.f32.xlu1 %v320_v4 }
  0x20   : > { %3645 = vmatpush3.msra.mxu0 %v434_v16 }
  0x21   : > { %3646 = vmatprep.subr.mxu0 %v433_v19 }
  0x22   : > { %3647 = vmatpush3.msra.mxu0 %v433_v19 }
  0x23   : > { %331 = vadd.xlane.f32.xlu0 %v321_v6  ;;  %333 = vadd.xlane.f32.xlu1 %v322_v7 }
  0x24   : > { %3648 = vmatprep.subr.mxu0 %v432_v22 }
  0x25   : > { %3649 = vmatpush3.msra.mxu0 %v432_v22 }
  0x26   : > { %3650 = vmatprep.subr.mxu0 %v431_v23 }
  0x27   : > { %303 = vadd.xlane.f32.xlu0 %v4482_v9  ;;  %305 = vadd.xlane.f32.xlu1 %v4485_v10 }
  0x28   : > { %3651 = vmatpush3.msra.mxu0 %v431_v23 }
  0x29   : > { %3652 = vmatprep.subr.mxu0 %v430_v24 }
  0x2a   : > { %3653 = vmatpush3.msra.mxu0 %v430_v24 }
  0x2b   : > { %335 = vadd.xlane.f32.xlu0 %v323_v13  ;;  %337 = vadd.xlane.f32.xlu1 %v324_v14 }
  0x2c   : > { %3654 = vmatprep.subr.mxu0 %v429_v25 }
  0x2d   : > { %3655 = vmatpush3.msra.mxu0 %v429_v25 }
  0x2e   : > { %3656 = vmatprep.subr.mxu0 %v428_v26 }
  0x2f   : > { %307 = vadd.xlane.f32.xlu0 %v4506_v17  ;;  %309 = vadd.xlane.f32.xlu1 %v4509_v18 }
  0x30   : > { %3657 = vmatpush3.msra.mxu0 %v428_v26 }
  0x31   : > { %3658 = vmatprep.subr.mxu0 %v427_v27 }
  0x32   : > { %3659 = vmatpush3.msra.mxu0 %v427_v27 }
  0x33   : > { %339 = vadd.xlane.f32.xlu0 %v325_v20  ;;  %341 = vadd.xlane.f32.xlu1 %v326_v21  ;;  %v3258_v20 = vld [vmem:[%s5503_s1] ss:$0 sm:$0xff] }
  0x34   : > { %3660 = vmatprep.subr.mxu0 %v426_v28 }
  0x35   : > { %3661 = vmatpush3.msra.mxu0 %v426_v28  ;;  %v3259_v28 = vld [vmem:[%s5503_s1 + $0x1] ss:$0 sm:$0xff] }
  0x36   : > { %3662 = vmatprep.subr.mxu0 %v425_v29 }
  0x37   : > { %3663 = vmatpush3.msra.mxu0 %v425_v29 }
  0x38   : > { %3664 = vmatprep.subr.mxu0 %v424_v30 }
  0x39   : > { %3665 = vmatpush3.msra.mxu0 %v424_v30 }
  0x3a   : > { %3666 = vmatprep.subr.mxu0 %v423_v31 }
  0x3b   : > { %3667 = vmatpush3.msra.mxu0 %v423_v31 }
  0xa0   : > { %v302_v32 = vpop.xlane.xlu1 %301  ;;  %v296_v33 = vpop.xlane.xlu0 %295 }
  0xa1   : > { %v311_v34 = vmul.f32 0.03125, %v296_v33  ;;  %v4550_v41 = vmul.f32 0.03125, %v302_v32 }
  0xa3   : > { %v351_v37 = vmul.f32 %v311_v34, %v311_v34  ;;  %v354_v49 = vmul.f32 %v4550_v41, %v4550_v41  ;;  %v367_v15 = vsub.f32 %v4458_v1, %v311_v34 }
  0xa4   : > { %v298_v35 = vpop.xlane.xlu0 %297  ;;  %v328_v36 = vpop.xlane.xlu1 %327 }
  0xa5   : > { %v312_v38 = vmul.f32 0.03125, %v298_v35  ;;  %v343_v39 = vmul.f32 0.03125, %v328_v36 }
  0xa7   : > { %v359_v40 = vsub.f32 %v343_v39, %v351_v37  ;;  %v352_v44 = vmul.f32 %v312_v38, %v312_v38  ;;  %v368_v26 = vsub.f32 %v4465_v3, %v312_v38 }
  0xa8   : > { %v300_v42 = vpop.xlane.xlu0 %299  ;;  %v330_v43 = vpop.xlane.xlu1 %329 }
  0xa9   : > { %v375_v45 = vadd.f32 1e-05, %v359_v40  ;;  %v4552_v46 = vmul.f32 0.03125, %v300_v42  ;;  %v344_v47 = vmul.f32 0.03125, %v330_v43  ;;  %v370_v42 = vsub.f32 %v4455_v0, %v4550_v41 }
  0xab   : > { %4100 = vrsqrt.f32 %v375_v45  ;;  %v360_v48 = vsub.f32 %v344_v47, %v352_v44  ;;  %v353_v52 = vmul.f32 %v4552_v46, %v4552_v46  ;;  %v369_v37 = vsub.f32 %v4471_v5, %v4552_v46 }
  0xac   : > { %v332_v50 = vpop.xlane.xlu0 %331  ;;  %v334_v51 = vpop.xlane.xlu1 %333 }
  0xad   : > { %v376_v53 = vadd.f32 1e-05, %v360_v48  ;;  %v345_v54 = vmul.f32 0.03125, %v332_v50  ;;  %v346_v55 = vmul.f32 0.03125, %v334_v51 }
  0xaf   : > { %4102 = vrsqrt.f32 %v376_v53  ;;  %v361_v56 = vsub.f32 %v345_v54, %v353_v52  ;;  %v362_v57 = vsub.f32 %v346_v55, %v354_v49 }
  0xb0   : > { %v304_v58 = vpop.xlane.xlu0 %303  ;;  %v306_v59 = vpop.xlane.xlu1 %305 }
  0xb1   : > { %v377_v60 = vadd.f32 1e-05, %v361_v56  ;;  %v378_v61 = vadd.f32 1e-05, %v362_v57  ;;  %v4558_v62 = vmul.f32 0.03125, %v304_v58  ;;  %v4560_v63 = vmul.f32 0.03125, %v306_v59 }
  0xb3   : > { %4104 = vrsqrt.f32 %v377_v60  ;;  %v356_v2 = vmul.f32 %v4560_v63, %v4560_v63  ;;  %v355_v7 = vmul.f32 %v4558_v62, %v4558_v62  ;;  %v371_v52 = vsub.f32 %v4482_v9, %v4558_v62 }
  0xb4   : > { %4106 = vrsqrt.f32 %v378_v61  ;;  %v336_v4 = vpop.xlane.xlu0 %335  ;;  %v338_v6 = vpop.xlane.xlu1 %337  ;;  %v372_v0 = vsub.f32 %v4485_v10, %v4560_v63 }
  0xb5   : > { %v347_v8 = vmul.f32 0.03125, %v336_v4  ;;  %v348_v11 = vmul.f32 0.03125, %v338_v6 }
  0xb7   : > { %v363_v12 = vsub.f32 %v347_v8, %v355_v7  ;;  %v364_v13 = vsub.f32 %v348_v11, %v356_v2  ;;  %v3260_v11 = vld [vmem:[%s5505_s3] ss:$0 sm:$0xff] }
  0xb8   : > { %v4101_v14 = vpop.eup %4100  ;;  %v308_v16 = vpop.xlane.xlu0 %307 }
  0xb9   : > { %v310_v19 = vpop.xlane.xlu1 %309  ;;  %v379_v21 = vadd.f32 1e-05, %v363_v12  ;;  %v380_v22 = vadd.f32 1e-05, %v364_v13  ;;  %v317_v23 = vmul.f32 0.03125, %v308_v16  ;;  %v391_v25 = vmul.f32 %v4101_v14, %v367_v15 }
  0xba   : > { %v318_v24 = vmul.f32 0.03125, %v310_v19 }
  0xbb   : > { %4108 = vrsqrt.f32 %v379_v21  ;;  %v403_v31 = vmul.f32 %v3258_v20, %v391_v25  ;;  %v357_v32 = vmul.f32 %v317_v23, %v317_v23  ;;  %v373_v60 = vsub.f32 %v4506_v17, %v317_v23 }
  0xbc   : > { %v358_v27 = vmul.f32 %v318_v24, %v318_v24  ;;  %v4103_v1 = vpop.eup %4102  ;;  %4110 = vrsqrt.f32 %v380_v22  ;;  %v340_v29 = vpop.xlane.xlu0 %339  ;;  %v374_v2 = vsub.f32 %v4509_v18, %v318_v24 }
  0xbd   : > { %v342_v30 = vpop.xlane.xlu1 %341  ;;  %v349_v33 = vmul.f32 0.03125, %v340_v29  ;;  %v392_v35 = vmul.f32 %v4103_v1, %v368_v26  ;;  %v415_v36 = vadd.f32 %v3259_v28, %v403_v31 }
  0xbe   : > { %v350_v34 = vmul.f32 0.03125, %v342_v30 }
  0xbf   : > { %v365_v3 = vsub.f32 %v349_v33, %v357_v32  ;;  %v404_v39 = vmul.f32 %v3258_v20, %v392_v35  ;;  %3668 = vmatprep.mubr.f32.mxu0 %v415_v36 }
  0xc0   : > { %v366_v38 = vsub.f32 %v350_v34, %v358_v27  ;;  %v4105_v40 = vpop.eup %4104 }
  0xc1   : > { %v4107_v43 = vpop.eup %4106  ;;  %v381_v44 = vadd.f32 1e-05, %v365_v3  ;;  %v416_v47 = vadd.f32 %v3259_v28, %v404_v39  ;;  %v393_v48 = vmul.f32 %v4105_v40, %v369_v37 }
  0xc2   : > { %v382_v45 = vadd.f32 1e-05, %v366_v38  ;;  %v394_v49 = vmul.f32 %v4107_v43, %v370_v42 }
  0xc3   : > { %4112 = vrsqrt.f32 %v381_v44  ;;  %3669 = vmatmul.mubr.f32.vlgmr.msra.gmra.mxu0 %v416_v47  ;;  %v405_v50 = vmul.f32 %v3258_v20, %v393_v48 }
  0xc4   : > { %4114 = vrsqrt.f32 %v382_v45  ;;  %v406_v51 = vmul.f32 %v3258_v20, %v394_v49 }
  0xc5   : > { %v417_v5 = vadd.f32 %v3259_v28, %v405_v50 }
  0xc6   : > { %v418_v46 = vadd.f32 %v3259_v28, %v406_v51 }
  0xc7   : > { %3671 = vmatprep.mubr.f32.mxu0 %v417_v5 }
  0xc8   : > { %v4109_v53 = vpop.eup %4108  ;;  %3672 = vmatmul.mubr.f32.gmra.mxu0 %v418_v46 }
  0xc9   : > { %v4111_v41 = vpop.eup %4110  ;;  %v395_v54 = vmul.f32 %v4109_v53, %v371_v52 }
  0xca   : > { %v396_v55 = vmul.f32 %v4111_v41, %v372_v0 }
  0xcb   : > { %v407_v56 = vmul.f32 %v3258_v20, %v395_v54 }
  0xcc   : > { %v408_v57 = vmul.f32 %v3258_v20, %v396_v55 }
  0xcd   : > { %v419_v58 = vadd.f32 %v3259_v28, %v407_v56 }
  0xce   : > { %v420_v59 = vadd.f32 %v3259_v28, %v408_v57 }
  0xcf   : > { %3674 = vmatprep.mubr.f32.mxu0 %v419_v58 }
  0xd0   : > { %v4113_v61 = vpop.eup %4112  ;;  %3675 = vmatmul.mubr.f32.gmra.mxu0 %v420_v59 }
  0xd1   : > { %v4115_v9 = vpop.eup %4114  ;;  %v397_v62 = vmul.f32 %v4113_v61, %v373_v60 }
  0xd2   : > { %v398_v4 = vmul.f32 %v4115_v9, %v374_v2 }
  0xd3   : > { %v409_v6 = vmul.f32 %v3258_v20, %v397_v62 }
  0xd4   : > { %v410_v10 = vmul.f32 %v3258_v20, %v398_v4 }
  0xd5   : > { %v421_v63 = vadd.f32 %v3259_v28, %v409_v6 }
  0xd6   : > { %v422_v7 = vadd.f32 %v3259_v28, %v410_v10 }
  0xd7   : > { %3677 = vmatprep.mubr.f32.mxu0 %v421_v63 }
  0xd8   : > { %3678 = vmatmul.mubr.f32.gmra.mxu0 %v422_v7 }
 0x183   : > { %v3670_v8 = vpop.f32.mrf.mxu0 }
 0x184   : > { %v4602_v24 = vadd.f32 %v3670_v8, %v3260_v11 }
 0x185   : > { %v512_v17 = vpop.f32.mrf.mxu0 }
 0x186   : > { %v4587_v12 = vadd.f32 %v3260_v11, %v512_v17 }
 0x188   : > { %3696 = vmatprep.mubr.msk.f32.mxu1 %vm575_vm0, %v4587_v12  ;;  %v3673_v18 = vpop.f32.mrf.mxu0 }
 0x189   : > { %v4596_v22 = vadd.f32 %v3673_v18, %v3260_v11 }
 0x18a   : > { %v522_v13 = vpop.f32.mrf.mxu0 }
 0x18b   : > { %v4609_v26 = vadd.f32 %v3260_v11, %v522_v13 }
 0x190   : > { %v3676_v14 = vpop.f32.mrf.mxu0 }
 0x191   : > { %v4599_v23 = vadd.f32 %v3676_v14, %v3260_v11 }
 0x192   : > { %v532_v15 = vpop.f32.mrf.mxu0 }
 0x193   : > { %v4605_v25 = vadd.f32 %v3260_v11, %v532_v15 }
 0x198   : > { %v3679_v16 = vpop.f32.mrf.mxu0 }
 0x199   : > { %v4591_v19 = vadd.f32 %v3679_v16, %v3260_v11 }
 0x19a   : > { %v542_v20 = vpop.f32.mrf.mxu0 }
 0x19b   : > { %v4593_v21 = vadd.f32 %v3260_v11, %v542_v20  ;;  %573 = vrot.lane.b32.xlu0 %v4591_v19, %s4346_s16 }
 0x19d   : > { %571 = vrot.lane.b32.xlu1 %v4593_v21, %s4346_s16 }
 0x19f   : > { %565 = vrot.lane.b32.xlu0 %v4596_v22, %s4346_s16 }
 0x1a1   : > { %569 = vrot.lane.b32.xlu1 %v4599_v23, %s4346_s16 }
 0x1a3   : > { %561 = vrot.lane.b32.xlu0 %v4602_v24, %s4346_s16 }
 0x1a5   : > { %567 = vrot.lane.b32.xlu1 %v4605_v25, %s4346_s16 }
 0x1a7   : > { %986 = vrot.lane.b32.xlu0 %v4591_v19, %s4347_s18 }
 0x1a9   : > { %563 = vrot.lane.b32.xlu1 %v4609_v26, %s4346_s16 }
 0x1ab   : > { %982 = vrot.lane.b32.xlu0 %v4599_v23, %s4347_s18 }
 0x1ad   : > { %559 = vrot.lane.b32.xlu1 %v4587_v12, %s4346_s16  ;;  %s4355_s16 = smov 48  }
 0x1af   : > { %978 = vrot.lane.b32.xlu0 %v4596_v22, %s4347_s18 }
 0x1b1   : > { %984 = vrot.lane.b32.xlu1 %v4593_v21, %s4347_s18 }
 0x1b3   : > { %974 = vrot.lane.b32.xlu0 %v4602_v24, %s4347_s18 }
 0x1b5   : > { %980 = vrot.lane.b32.xlu1 %v4605_v25, %s4347_s18 }
 0x1b7   : > { %956 = vrot.lane.b32.xlu0 %v4587_v12, %s4348_s19 }
 0x1b9   : > { %976 = vrot.lane.b32.xlu1 %v4609_v26, %s4347_s18 }
 0x1bb   : > { %960 = vrot.lane.b32.xlu0 %v4609_v26, %s4348_s19 }
 0x1bd   : > { %972 = vrot.lane.b32.xlu1 %v4587_v12, %s4347_s18  ;;  %s4356_s18 = smov 40  }
 0x1bf   : > { %964 = vrot.lane.b32.xlu0 %v4605_v25, %s4348_s19 }
 0x1c1   : > { %958 = vrot.lane.b32.xlu1 %v4602_v24, %s4348_s19 }
 0x1c3   : > { %968 = vrot.lane.b32.xlu0 %v4593_v21, %s4348_s19 }
 0x1c5   : > { %962 = vrot.lane.b32.xlu1 %v4596_v22, %s4348_s19 }
 0x1c7   : > { %816 = vrot.lane.b32.xlu0 %v4591_v19, %s4349_s20 }
 0x1c9   : > { %966 = vrot.lane.b32.xlu1 %v4599_v23, %s4348_s19 }
 0x1cb   : > { %812 = vrot.lane.b32.xlu0 %v4599_v23, %s4349_s20 }
 0x1cd   : > { %970 = vrot.lane.b32.xlu1 %v4591_v19, %s4348_s19 }
 0x1cf   : > { %808 = vrot.lane.b32.xlu0 %v4596_v22, %s4349_s20 }
 0x1d1   : > { %810 = vrot.lane.b32.xlu1 %v4605_v25, %s4349_s20 }
 0x1d3   : > { %1227 = vrot.lane.b32.xlu0 %v4591_v19, %s4350_s21 }
 0x1d5   : > { %806 = vrot.lane.b32.xlu1 %v4609_v26, %s4349_s20 }
 0x1d9   : > { %804 = vrot.lane.b32.xlu1 %v4602_v24, %s4349_s20 }
 0x1dd   : > { %802 = vrot.lane.b32.xlu1 %v4587_v12, %s4349_s20 }
 0x1e1   : > { %814 = vrot.lane.b32.xlu1 %v4593_v21, %s4349_s20 }
 0x20d   : > { %v574_v27 = vpop.permute.xlu0 %573 }
 0x20e   : > { %3680 = vmatprep.subr.msk.mxu1 %vm575_vm0, %v574_v27 }
 0x20f   : > { %3681 = vmatpush3.xpose.msk.msra.mxu1 %vm575_vm0, %v574_v27  ;;  %v572_v28 = vpop.permute.xlu1 %571 }
 0x210   : > { %3682 = vmatprep.subr.msk.mxu1 %vm575_vm0, %v572_v28 }
 0x211   : > { %v566_v1 = vpop.permute.xlu0 %565 }
 0x213   : > { %3683 = vmatpush3.xpose.msk.msra.mxu1 %vm575_vm0, %v572_v28  ;;  %v570_v29 = vpop.permute.xlu1 %569 }
 0x214   : > { %3684 = vmatprep.subr.msk.mxu1 %vm575_vm0, %v570_v29 }
 0x215   : > { %v562_v30 = vpop.permute.xlu0 %561 }
 0x217   : > { %3685 = vmatpush3.xpose.msk.msra.mxu1 %vm575_vm0, %v570_v29  ;;  %v568_v31 = vpop.permute.xlu1 %567 }
 0x218   : > { %3686 = vmatprep.subr.msk.mxu1 %vm575_vm0, %v568_v31 }
 0x219   : > { %v987_v32 = vpop.permute.xlu0 %986 }
 0x21b   : > { %3687 = vmatpush3.xpose.msk.msra.mxu1 %vm575_vm0, %v568_v31  ;;  %v564_v33 = vpop.permute.xlu1 %563 }
 0x21c   : > { %3688 = vmatprep.subr.msk.mxu1 %vm575_vm0, %v566_v1 }
 0x21d   : > { %v983_v34 = vpop.permute.xlu0 %982 }
 0x21f   : > { %3689 = vmatpush3.xpose.msk.msra.mxu1 %vm575_vm0, %v566_v1  ;;  %v560_v35 = vpop.permute.xlu1 %559 }
 0x220   : > { %3690 = vmatprep.subr.msk.mxu1 %vm575_vm0, %v564_v33 }
 0x221   : > { %v979_v36 = vpop.permute.xlu0 %978 }
 0x223   : > { %3691 = vmatpush3.xpose.msk.msra.mxu1 %vm575_vm0, %v564_v33  ;;  %v985_v37 = vpop.permute.xlu1 %984 }
 0x224   : > { %3692 = vmatprep.subr.msk.mxu1 %vm575_vm0, %v562_v30 }
 0x225   : > { %v975_v3 = vpop.permute.xlu0 %974 }
 0x227   : > { %3693 = vmatpush3.xpose.msk.msra.mxu1 %vm575_vm0, %v562_v30  ;;  %v981_v38 = vpop.permute.xlu1 %980 }
 0x228   : > { %3694 = vmatprep.subr.msk.mxu1 %vm575_vm0, %v560_v35 }
 0x229   : > { %v957_v39 = vpop.permute.xlu0 %956 }
 0x22b   : > { %3695 = vmatpush3.xpose.msk.msra.mxu1 %vm575_vm0, %v560_v35  ;;  %v977_v40 = vpop.permute.xlu1 %976 }
 0x22c   : > { %3736 = vmatprep.subr.msk.mxu1 %vm575_vm0, %v987_v32 }
 0x22d   : > { %v961_v42 = vpop.permute.xlu0 %960 }
 0x22e   : > { %3697 = vmatmul.mubr.msk.f32.vlgmr.msra.gmra.mxu1 %vm575_vm0, %v4602_v24 }
 0x22f   : > { %3699 = vmatprep.mubr.msk.f32.mxu1 %vm575_vm0, %v4609_v26  ;;  %3737 = vmatpush3.xpose.msk.msra.mxu1 %vm575_vm0, %v987_v32  ;;  %v973_v43 = vpop.permute.xlu1 %972 }
 0x230   : > { %3738 = vmatprep.subr.msk.mxu1 %vm575_vm0, %v985_v37 }
 0x231   : > { %v965_v44 = vpop.permute.xlu0 %964 }
 0x232   : > { %3700 = vmatmul.mubr.msk.f32.gmra.mxu1 %vm575_vm0, %v4596_v22 }
 0x233   : > { %3702 = vmatprep.mubr.msk.f32.mxu1 %vm575_vm0, %v4605_v25  ;;  %3739 = vmatpush3.xpose.msk.msra.mxu1 %vm575_vm0, %v985_v37  ;;  %v959_v45 = vpop.permute.xlu1 %958 }
 0x234   : > { %3740 = vmatprep.subr.msk.mxu1 %vm575_vm0, %v983_v34 }
 0x235   : > { %v969_v47 = vpop.permute.xlu0 %968 }
 0x236   : > { %3703 = vmatmul.mubr.msk.f32.gmra.mxu1 %vm575_vm0, %v4599_v23 }
 0x237   : > { %3705 = vmatprep.mubr.msk.f32.mxu1 %vm575_vm0, %v4593_v21  ;;  %3741 = vmatpush3.xpose.msk.msra.mxu1 %vm575_vm0, %v983_v34  ;;  %v963_v48 = vpop.permute.xlu1 %962 }
 0x238   : > { %3742 = vmatprep.subr.msk.mxu1 %vm575_vm0, %v981_v38 }
 0x239   : > { %v817_v49 = vpop.permute.xlu0 %816 }
 0x23a   : > { %3706 = vmatmul.mubr.msk.f32.gmra.mxu1 %vm575_vm0, %v4591_v19  ;;  %3708 = vmatprep.subr.mxu0 %v817_v49 }
 0x23b   : > { %3709 = vmatpush3.msra.mxu0 %v817_v49  ;;  %3743 = vmatpush3.xpose.msk.msra.mxu1 %vm575_vm0, %v981_v38  ;;  %v967_v50 = vpop.permute.xlu1 %966 }
 0x23c   : > { %3752 = vmatprep.mubr.msk.f32.mxu1 %vm575_vm0, %v957_v39  ;;  %3744 = vmatprep.subr.msk.mxu1 %vm575_vm0, %v979_v36 }
 0x23d   : > { %v813_v0 = vpop.permute.xlu0 %812 }
 0x23f   : > { %3745 = vmatpush3.xpose.msk.msra.mxu1 %vm575_vm0, %v979_v36  ;;  %v971_v51 = vpop.permute.xlu1 %970 }
 0x240   : > { %3746 = vmatprep.subr.msk.mxu1 %vm575_vm0, %v977_v40 }
 0x241   : > { %v809_v54 = vpop.permute.xlu0 %808 }
 0x243   : > { %3747 = vmatpush3.xpose.msk.msra.mxu1 %vm575_vm0, %v977_v40  ;;  %v811_v5 = vpop.permute.xlu1 %810 }
 0x244   : > { %3748 = vmatprep.subr.msk.mxu1 %vm575_vm0, %v975_v3 }
 0x245   : > { %v4693_v55 = vpop.permute.xlu0 %1227 }
 0x247   : > { %3749 = vmatpush3.xpose.msk.msra.mxu1 %vm575_vm0, %v975_v3  ;;  %v807_v46 = vpop.permute.xlu1 %806 }
 0x248   : > { %3750 = vmatprep.subr.msk.mxu1 %vm575_vm0, %v973_v43 }
 0x24b   : > { %3751 = vmatpush3.xpose.msk.msra.mxu1 %vm575_vm0, %v973_v43  ;;  %v805_v52 = vpop.permute.xlu1 %804 }
 0x24e   : > { %3753 = vmatmul.mubr.msk.f32.vlgmr.msra.gmra.mxu1 %vm575_vm0, %v959_v45 }
 0x24f   : > { %3755 = vmatprep.mubr.msk.f32.mxu1 %vm575_vm0, %v961_v42  ;;  %v803_v53 = vpop.permute.xlu1 %802 }
 0x252   : > { %3756 = vmatmul.mubr.msk.f32.gmra.mxu1 %vm575_vm0, %v963_v48 }
 0x253   : > { %3758 = vmatprep.mubr.msk.f32.mxu1 %vm575_vm0, %v965_v44  ;;  %v815_v41 = vpop.permute.xlu1 %814 }
 0x254   : > { %3710 = vmatprep.subr.mxu0 %v815_v41 }
 0x255   : > { %3711 = vmatpush3.msra.mxu0 %v815_v41 }
 0x256   : > { %3712 = vmatprep.subr.mxu0 %v813_v0  ;;  %3759 = vmatmul.mubr.msk.f32.gmra.mxu1 %vm575_vm0, %v967_v50 }
 0x257   : > { %3713 = vmatpush3.msra.mxu0 %v813_v0  ;;  %3761 = vmatprep.mubr.msk.f32.mxu1 %vm575_vm0, %v969_v47 }
 0x258   : > { %3714 = vmatprep.subr.mxu0 %v811_v5 }
 0x259   : > { %3715 = vmatpush3.msra.mxu0 %v811_v5 }
 0x25a   : > { %3716 = vmatprep.subr.mxu0 %v809_v54  ;;  %3762 = vmatmul.mubr.msk.f32.gmra.mxu1 %vm575_vm0, %v971_v51 }
 0x25b   : > { %3717 = vmatpush3.msra.mxu0 %v809_v54 }
 0x25c   : > { %3718 = vmatprep.subr.mxu0 %v807_v46 }
 0x25d   : > { %3719 = vmatpush3.msra.mxu0 %v807_v46 }
 0x25e   : > { %3720 = vmatprep.subr.mxu0 %v805_v52 }
 0x25f   : > { %3721 = vmatpush3.msra.mxu0 %v805_v52 }
 0x260   : > { %3722 = vmatprep.subr.mxu0 %v803_v53 }
 0x261   : > { %3723 = vmatpush3.msra.mxu0 %v803_v53 }
 0x262   : > { %3764 = vmatprep.subr.mxu0 %v4693_v55 }
 0x2ee   : > { %v3698_v56 = vpop.f32.mrf.mxu1 }
 0x2ef   : > { %v717_v57 = vsel %vm713_vm1, %v3698_v56, -inf }
 0x2f0   : > { %718 = vmax.xlane.f32.xlu1 %v717_v57  ;;  %v674_v58 = vpop.f32.mrf.mxu1 }
 0x2f1   : > { %v714_v59 = vsel %vm713_vm1, %v674_v58, -inf }
 0x2f2   : > { %715 = vmax.xlane.f32.xlu0 %v714_v59  ;;  %v3701_v60 = vpop.f32.mrf.mxu1 }
 0x2f3   : > { %v723_v2 = vsel %vm713_vm1, %v3701_v60, -inf }
 0x2f4   : > { %v4698_v61 = vpop.f32.mrf.mxu1 }
 0x2f5   : > { %v720_v6 = vsel %vm713_vm1, %v4698_v61, -inf }
 0x2f6   : > { %724 = vmax.xlane.f32.xlu0 %v723_v2  ;;  %v3704_v9 = vpop.f32.mrf.mxu1 }
 0x2f7   : > { %v729_v62 = vsel %vm713_vm1, %v3704_v9, -inf }
 0x2f8   : > { %730 = vmax.xlane.f32.xlu1 %v729_v62  ;;  %v4702_v4 = vpop.f32.mrf.mxu1 }
 0x2f9   : > { %v726_v7 = vsel %vm713_vm1, %v4702_v4, -inf }
 0x2fa   : > { %721 = vmax.xlane.f32.xlu0 %v720_v6  ;;  %v3707_v10 = vpop.f32.mrf.mxu1 }
 0x2fb   : > { %v735_v63 = vsel %vm713_vm1, %v3707_v10, -inf }
 0x2fc   : > { %736 = vmax.xlane.f32.xlu1 %v735_v63  ;;  %v4709_v8 = vpop.f32.mrf.mxu1 }
 0x2fd   : > { %v732_v11 = vsel %vm713_vm1, %v4709_v8, -inf }
 0x2fe   : > { %727 = vmax.xlane.f32.xlu0 %v726_v7 }
 0x302   : > { %733 = vmax.xlane.f32.xlu0 %v732_v11 }
 0x30e   : > { %v4713_v17 = vpop.f32.mrf.mxu1 }
 0x30f   : > { %v1128_v18 = vsel %vm713_vm1, %v4713_v17, -inf }
 0x310   : > { %1129 = vmax.xlane.f32.xlu1 %v1128_v18  ;;  %v4717_v13 = vpop.f32.mrf.mxu1 }
 0x311   : > { %v1125_v14 = vsel %vm713_vm1, %v4717_v13, -inf }
 0x312   : > { %1126 = vmax.xlane.f32.xlu0 %v1125_v14  ;;  %v4721_v15 = vpop.f32.mrf.mxu1 }
 0x313   : > { %v1134_v16 = vsel %vm713_vm1, %v4721_v15, -inf }
 0x314   : > { %1135 = vmax.xlane.f32.xlu1 %v1134_v16  ;;  %v4725_v20 = vpop.f32.mrf.mxu1 }
 0x315   : > { %v1131_v27 = vsel %vm713_vm1, %v4725_v20, -inf }
 0x316   : > { %1132 = vmax.xlane.f32.xlu0 %v1131_v27  ;;  %v4729_v28 = vpop.f32.mrf.mxu1 }
 0x317   : > { %v1140_v1 = vsel %vm713_vm1, %v4729_v28, -inf }
 0x318   : > { %1141 = vmax.xlane.f32.xlu1 %v1140_v1  ;;  %v4733_v29 = vpop.f32.mrf.mxu1 }
 0x319   : > { %v1137_v30 = vsel %vm713_vm1, %v4733_v29, -inf }
 0x31a   : > { %1138 = vmax.xlane.f32.xlu0 %v1137_v30  ;;  %v4737_v31 = vpop.f32.mrf.mxu1 }
 0x31b   : > { %v1146_v32 = vsel %vm713_vm1, %v4737_v31, -inf }
 0x31c   : > { %1147 = vmax.xlane.f32.xlu1 %v1146_v32  ;;  %v4749_v33 = vpop.f32.mrf.mxu1 }
 0x31d   : > { %v1143_v34 = vsel %vm713_vm1, %v4749_v33, -inf }
 0x32d   : > { %1225 = vrot.lane.b32.xlu1 %v4593_v21, %s4350_s21 }
 0x330   : > { %1223 = vrot.lane.b32.xlu0 %v4599_v23, %s4350_s21 }
 0x334   : > { %1221 = vrot.lane.b32.xlu0 %v4605_v25, %s4350_s21 }
 0x338   : > { %1219 = vrot.lane.b32.xlu0 %v4596_v22, %s4350_s21 }
 0x357   : > { %1144 = vmax.xlane.f32.xlu0 %v1143_v34 }
 0x379   : > { %v719_v35 = vpop.xlane.xlu1 %718 }
 0x37a   : > { %v739_v36 = vsub.f32 %v3698_v56, %v719_v35 }
 0x37b   : > { %v716_v37 = vpop.xlane.xlu0 %715 }
 0x37c   : > { %v748_v3 = vmul.f32 1.442695, %v739_v36  ;;  %v738_v38 = vsub.f32 %v674_v58, %v716_v37 }
 0x37e   : > { %4116 = vpow2.f32 %v748_v3  ;;  %v746_v39 = vmul.f32 1.442695, %v738_v38 }
 0x37f   : > { %v725_v40 = vpop.xlane.xlu0 %724 }
 0x380   : > { %4118 = vpow2.f32 %v746_v39  ;;  %v741_v42 = vsub.f32 %v3701_v60, %v725_v40 }
 0x381   : > { %v731_v43 = vpop.xlane.xlu1 %730 }
 0x382   : > { %v752_v44 = vmul.f32 1.442695, %v741_v42  ;;  %v743_v45 = vsub.f32 %v3704_v9, %v731_v43 }
 0x383   : > { %v722_v47 = vpop.xlane.xlu0 %721 }
 0x384   : > { %4120 = vpow2.f32 %v752_v44  ;;  %v756_v48 = vmul.f32 1.442695, %v743_v45  ;;  %v740_v49 = vsub.f32 %v4698_v61, %v722_v47 }
 0x385   : > { %v737_v50 = vpop.xlane.xlu1 %736 }
 0x386   : > { %4122 = vpow2.f32 %v756_v48  ;;  %v750_v51 = vmul.f32 1.442695, %v740_v49  ;;  %v745_v5 = vsub.f32 %v3707_v10, %v737_v50 }
 0x387   : > { %v728_v46 = vpop.xlane.xlu0 %727 }
 0x388   : > { %4124 = vpow2.f32 %v750_v51  ;;  %v760_v52 = vmul.f32 1.442695, %v745_v5  ;;  %v742_v53 = vsub.f32 %v4702_v4, %v728_v46 }
 0x38a   : > { %4126 = vpow2.f32 %v760_v52  ;;  %v754_v0 = vmul.f32 1.442695, %v742_v53 }
 0x38b   : > { %v4755_v41 = vpop.eup %4116  ;;  %v734_v54 = vpop.xlane.xlu0 %733 }
 0x38c   : > { %4128 = vpow2.f32 %v754_v0  ;;  %v744_v56 = vsub.f32 %v4709_v8, %v734_v54  ;;  %v765_v57 = vsel %vm713_vm1, %v4755_v41, 0.0 }
 0x38d   : > { %v4760_v58 = vpop.eup %4118  ;;  %766 = vadd.xlane.f32.xlu1 %v765_v57 }
 0x38e   : > { %v758_v59 = vmul.f32 1.442695, %v744_v56  ;;  %v762_v60 = vsel %vm713_vm1, %v4760_v58, 0.0 }
 0x38f   : > { %763 = vadd.xlane.f32.xlu0 %v762_v60 }
 0x390   : > { %4130 = vpow2.f32 %v758_v59 }
 0x391   : > { %v4764_v61 = vpop.eup %4120 }
 0x392   : > { %v771_v2 = vsel %vm713_vm1, %v4764_v61, 0.0 }
 0x393   : > { %v4768_v9 = vpop.eup %4122  ;;  %772 = vadd.xlane.f32.xlu1 %v771_v2 }
 0x394   : > { %v777_v6 = vsel %vm713_vm1, %v4768_v9, 0.0 }
 0x395   : > { %v4770_v62 = vpop.eup %4124 }
 0x396   : > { %v768_v4 = vsel %vm713_vm1, %v4770_v62, 0.0 }
 0x397   : > { %v4776_v10 = vpop.eup %4126  ;;  %769 = vadd.xlane.f32.xlu0 %v768_v4  ;;  %778 = vadd.xlane.f32.xlu1 %v777_v6 }
 0x398   : > { %v783_v18 = vsel %vm713_vm1, %v4776_v10, 0.0 }
 0x399   : > { %v4778_v63 = vpop.eup %4128  ;;  %v1130_v7 = vpop.xlane.xlu1 %1129 }
 0x39a   : > { %v1150_v8 = vsub.f32 %v4713_v17, %v1130_v7  ;;  %v774_v11 = vsel %vm713_vm1, %v4778_v63, 0.0 }
 0x39b   : > { %v1127_v14 = vpop.xlane.xlu0 %1126  ;;  %775 = vadd.xlane.f32.xlu0 %v774_v11  ;;  %784 = vadd.xlane.f32.xlu1 %v783_v18 }
 0x39c   : > { %v1159_v16 = vmul.f32 1.442695, %v1150_v8  ;;  %v1149_v27 = vsub.f32 %v4717_v13, %v1127_v14 }
 0x39d   : > { %v4786_v1 = vpop.eup %4130  ;;  %v1136_v30 = vpop.xlane.xlu1 %1135 }
 0x39e   : > { %4132 = vpow2.f32 %v1159_v16  ;;  %v1157_v32 = vmul.f32 1.442695, %v1149_v27  ;;  %v1152_v34 = vsub.f32 %v4721_v15, %v1136_v30  ;;  %v780_v17 = vsel %vm713_vm1, %v4786_v1, 0.0 }
 0x39f   : > { %781 = vadd.xlane.f32.xlu0 %v780_v17  ;;  %v1133_v39 = vpop.xlane.xlu0 %1132 }
 0x3a0   : > { %4134 = vpow2.f32 %v1157_v32  ;;  %v1163_v35 = vmul.f32 1.442695, %v1152_v34  ;;  %v1151_v42 = vsub.f32 %v4725_v20, %v1133_v39 }
 0x3a1   : > { %v1142_v43 = vpop.xlane.xlu1 %1141 }
 0x3a2   : > { %4136 = vpow2.f32 %v1163_v35  ;;  %v1161_v44 = vmul.f32 1.442695, %v1151_v42  ;;  %v1154_v48 = vsub.f32 %v4729_v28, %v1142_v43 }
 0x3a3   : > { %v1139_v40 = vpop.xlane.xlu0 %1138 }
 0x3a4   : > { %v1153_v45 = vsub.f32 %v4733_v29, %v1139_v40  ;;  %4138 = vpow2.f32 %v1161_v44  ;;  %v1167_v5 = vmul.f32 1.442695, %v1154_v48  ;;  %v955_v48 = vld [vmem:[%s5506_s4] sm:$0xff] }
 0x3a5   : > { %v1148_v50 = vpop.xlane.xlu1 %1147  ;;  %3806 = vmatprep.subr.mxu1 %v955_v48 }
 0x3a6   : > { %v1165_v49 = vmul.f32 1.442695, %v1153_v45  ;;  %v1156_v46 = vsub.f32 %v4737_v31, %v1148_v50  ;;  %3807 = vmatpush3.msra.mxu1 %v955_v48 }
 0x3a7   : > { %v4809_v47 = vpop.permute.xlu0 %1223 }
 0x3a8   : > { %4140 = vpow2.f32 %v1165_v49  ;;  %v1171_v52 = vmul.f32 1.442695, %v1156_v46 }
 0x3a9   : > { %4142 = vpow2.f32 %v1167_v5  ;;  %v1226_v6 = vpop.permute.xlu1 %1225 }
 0x3aa   : > { %4144 = vpow2.f32 %v1171_v52 }
 0x3ab   : > { %v4791_v36 = vpop.eup %4132  ;;  %v4812_v51 = vpop.permute.xlu0 %1221 }
 0x3ac   : > { %v1176_v37 = vsel %vm713_vm1, %v4791_v36, 0.0 }
 0x3ad   : > { %v4795_v13 = vpop.eup %4134  ;;  %1177 = vadd.xlane.f32.xlu0 %v1176_v37 }
 0x3ae   : > { %v1173_v3 = vsel %vm713_vm1, %v4795_v13, 0.0 }
 0x3af   : > { %v4799_v38 = vpop.eup %4136  ;;  %1174 = vadd.xlane.f32.xlu1 %v1173_v3  ;;  %v4815_v20 = vpop.permute.xlu0 %1219 }
 0x3b0   : > { %v1182_v15 = vsel %vm713_vm1, %v4799_v38, 0.0 }
 0x3b1   : > { %1183 = vadd.xlane.f32.xlu0 %v1182_v15  ;;  %v4817_v53 = vpop.eup %4138 }
 0x3b2   : > { %v1179_v28 = vsel %vm713_vm1, %v4817_v53, 0.0 }
 0x3b5   : > { %v4822_v56 = vpop.eup %4140 }
 0x3b6   : > { %v1185_v31 = vsel %vm713_vm1, %v4822_v56, 0.0  ;;  %v4826_v57 = vpop.eup %4142 }
 0x3b7   : > { %v1188_v59 = vsel %vm713_vm1, %v4826_v57, 0.0  ;;  %v4830_v60 = vpop.eup %4144 }
 0x3c0   : > { %1217 = vrot.lane.b32.xlu1 %v4609_v26, %s4350_s21 }
 0x3c7   : > { %1215 = vrot.lane.b32.xlu0 %v4602_v24, %s4350_s21 }
 0x3e0   : > { %v1145_v29 = vpop.xlane.xlu0 %1144 }
 0x3e1   : > { %v1155_v0 = vsub.f32 %v4749_v33, %v1145_v29  ;;  %v1194_v33 = vsel %vm713_vm1, %v4830_v60, 0.0  ;;  %v1366_v29 = vld [vmem:[%s5506_s4 + $0x8] sm:$0xff] }
 0x3e3   : > { %v1169_v54 = vmul.f32 1.442695, %v1155_v0 }
 0x3e4   : > { %1180 = vadd.xlane.f32.xlu1 %v1179_v28 }
 0x3e5   : > { %4146 = vpow2.f32 %v1169_v54 }
 0x3e8   : > { %1186 = vadd.xlane.f32.xlu1 %v1185_v31 }
 0x3ec   : > { %1189 = vadd.xlane.f32.xlu1 %v1188_v59 }
 0x3f0   : > { %1195 = vadd.xlane.f32.xlu1 %v1194_v33 }
 0x3f2   : > { %v4834_v2 = vpop.eup %4146 }
 0x3f3   : > { %v1191_v4 = vsel %vm713_vm1, %v4834_v2, 0.0 }
 0x3f4   : > { %1192 = vadd.xlane.f32.xlu0 %v1191_v4 }
 0x401   : > { %1655 = vrot.lane.b32.xlu1 %v4591_v19, %s4351_s22 }
 0x405   : > { %1653 = vrot.lane.b32.xlu1 %v4593_v21, %s4351_s22 }
 0x409   : > { %1649 = vrot.lane.b32.xlu1 %v4605_v25, %s4351_s22 }
 0x40a   : > { %1213 = vrot.lane.b32.xlu0 %v4587_v12, %s4350_s21 }
 0x40d   : > { %1645 = vrot.lane.b32.xlu1 %v4609_v26, %s4351_s22 }
 0x40e   : > { %1651 = vrot.lane.b32.xlu0 %v4599_v23, %s4351_s22 }
 0x411   : > { %1641 = vrot.lane.b32.xlu1 %v4587_v12, %s4351_s22 }
 0x412   : > { %1647 = vrot.lane.b32.xlu0 %v4596_v22, %s4351_s22 }
 0x415   : > { %1627 = vrot.lane.b32.xlu1 %v4602_v24, %s4352_s23 }
 0x416   : > { %1643 = vrot.lane.b32.xlu0 %v4602_v24, %s4351_s22  ;;  %v767_v7 = vpop.xlane.xlu1 %766 }
 0x417   : > { %4148 = vrcp.f32 %v767_v7 }
 0x418   : > { %v764_v8 = vpop.xlane.xlu0 %763 }
 0x419   : > { %4150 = vrcp.f32 %v764_v8  ;;  %1631 = vrot.lane.b32.xlu1 %v4596_v22, %s4352_s23 }
 0x41a   : > { %1625 = vrot.lane.b32.xlu0 %v4587_v12, %s4352_s23 }
 0x41c   : > { %v773_v11 = vpop.xlane.xlu1 %772 }
 0x41d   : > { %1635 = vrot.lane.b32.xlu1 %v4599_v23, %s4352_s23  ;;  %4152 = vrcp.f32 %v773_v11 }
 0x41e   : > { %1629 = vrot.lane.b32.xlu0 %v4609_v26, %s4352_s23 }
 0x420   : > { %v770_v18 = vpop.xlane.xlu0 %769  ;;  %v779_v14 = vpop.xlane.xlu1 %778 }
 0x421   : > { %4154 = vrcp.f32 %v770_v18  ;;  %1639 = vrot.lane.b32.xlu1 %v4591_v19, %s4352_s23 }
 0x422   : > { %1633 = vrot.lane.b32.xlu0 %v4605_v25, %s4352_s23  ;;  %4156 = vrcp.f32 %v779_v14 }
 0x424   : > { %v776_v16 = vpop.xlane.xlu0 %775  ;;  %v4149_v27 = vpop.eup %4148 }
 0x425   : > { %4158 = vrcp.f32 %v776_v16  ;;  %v785_v30 = vpop.xlane.xlu1 %784  ;;  %2201 = vrot.lane.b32.xlu1 %v4593_v21, %s4353_s29  ;;  %v789_v17 = vmul.f32 %v4149_v27, %v4755_v41 }
 0x426   : > { %v4151_v32 = vpop.eup %4150  ;;  %1637 = vrot.lane.b32.xlu0 %v4593_v21, %s4352_s23  ;;  %4160 = vrcp.f32 %v785_v30  ;;  %s4357_s23 = smov [#allocation2]  }
 0x427   : > { %v787_v34 = vmul.f32 %v4151_v32, %v4760_v58 }
 0x428   : > { %v782_v35 = vpop.xlane.xlu0 %781 }
 0x429   : > { %4162 = vrcp.f32 %v782_v35  ;;  %3724 = vmatprep.mubr.msk.f32.mxu0 %vm713_vm1, %v787_v34  ;;  %2197 = vrot.lane.b32.xlu1 %v4605_v25, %s4353_s29 }
 0x42a   : > { %2203 = vrot.lane.b32.xlu0 %v4591_v19, %s4353_s29  ;;  %3725 = vmatmul.mubr.msk.f32.vlgmr.msra.gmra.mxu0 %vm713_vm1, %v789_v17  ;;  %v4153_v37 = vpop.eup %4152 }
 0x42b   : > { %3765 = vmatpush3.msra.mxu0 %v4693_v55  ;;  %v793_v55 = vmul.f32 %v4153_v37, %v4764_v61 }
 0x42c   : > { %3766 = vmatprep.subr.mxu0 %v1226_v6 }
 0x42d   : > { %3767 = vmatpush3.msra.mxu0 %v1226_v6  ;;  %2193 = vrot.lane.b32.xlu1 %v4609_v26, %s4353_s29 }
 0x42e   : > { %v4155_v41 = vpop.eup %4154  ;;  %3768 = vmatprep.subr.mxu0 %v4809_v47  ;;  %2199 = vrot.lane.b32.xlu0 %v4599_v23, %s4353_s29 }
 0x42f   : > { %3769 = vmatpush3.msra.mxu0 %v4809_v47  ;;  %v791_v58 = vmul.f32 %v4155_v41, %v4770_v62  ;;  %v4157_v3 = vpop.eup %4156 }
 0x430   : > { %3770 = vmatprep.subr.mxu0 %v4812_v51  ;;  %v797_v61 = vmul.f32 %v4157_v3, %v4768_v9 }
 0x431   : > { %3771 = vmatpush3.msra.mxu0 %v4812_v51  ;;  %2189 = vrot.lane.b32.xlu1 %v4587_v12, %s4353_s29 }
 0x432   : > { %v4159_v15 = vpop.eup %4158  ;;  %3727 = vmatprep.mubr.msk.f32.mxu0 %vm713_vm1, %v791_v58  ;;  %3772 = vmatprep.subr.mxu0 %v4815_v20 }
 0x433   : > { %2195 = vrot.lane.b32.xlu0 %v4596_v22, %s4353_s29  ;;  %3728 = vmatmul.mubr.msk.f32.gmra.mxu0 %vm713_vm1, %v793_v55  ;;  %v795_v62 = vmul.f32 %v4159_v15, %v4778_v63  ;;  %v4161_v39 = vpop.eup %4160 }
 0x434   : > { %3773 = vmatpush3.msra.mxu0 %v4815_v20  ;;  %v801_v44 = vmul.f32 %v4161_v39, %v4776_v10 }
 0x435   : > { %2175 = vrot.lane.b32.xlu1 %v4602_v24, %s4354_s8  ;;  %3730 = vmatprep.mubr.msk.f32.mxu0 %vm713_vm1, %v795_v62 }
 0x436   : > { %v4163_v40 = vpop.eup %4162  ;;  %v1178_v42 = vpop.xlane.xlu0 %1177 }
 0x437   : > { %2191 = vrot.lane.b32.xlu0 %v4602_v24, %s4353_s29  ;;  %3731 = vmatmul.mubr.msk.f32.gmra.mxu0 %vm713_vm1, %v797_v61  ;;  %v799_v43 = vmul.f32 %v4163_v40, %v4786_v1  ;;  %s4288_s29 = sshll.u32 %s4357_s23, 4  ;;  %s4289_s29 = int_to_ptr.vmem [resolvable:$false] %s4288_s29 }
 0x438   : > { %v1175_v63 = vpop.xlane.xlu1 %1174 }
 0x439   : > { %4164 = vrcp.f32 %v1175_v63  ;;  %2179 = vrot.lane.b32.xlu1 %v4596_v22, %s4354_s8  ;;  %3733 = vmatprep.mubr.msk.f32.mxu0 %vm713_vm1, %v799_v43 }
 0x43a   : > { %v1184_v45 = vpop.xlane.xlu0 %1183  ;;  %4166 = vrcp.f32 %v1178_v42 }
 0x43b   : > { %2173 = vrot.lane.b32.xlu0 %v4587_v12, %s4354_s8  ;;  %3734 = vmatmul.mubr.msk.f32.gmra.mxu0 %vm713_vm1, %v801_v44 }
 0x43c   : > { %v1218_v9 = vpop.permute.xlu1 %1217 }
 0x43d   : > { %2183 = vrot.lane.b32.xlu1 %v4599_v23, %s4354_s8  ;;  %3774 = vmatprep.subr.mxu0 %v1218_v9 }
 0x43e   : > { %v1216_v47 = vpop.permute.xlu0 %1215  ;;  %3775 = vmatpush3.msra.mxu0 %v1218_v9 }
 0x43f   : > { %2177 = vrot.lane.b32.xlu0 %v4609_v26, %s4354_s8  ;;  %3776 = vmatprep.subr.mxu0 %v1216_v47 }
 0x440   : > { %3777 = vmatpush3.msra.mxu0 %v1216_v47 }
 0x441   : > { %2187 = vrot.lane.b32.xlu1 %v4591_v19, %s4354_s8 }
 0x443   : > { %2181 = vrot.lane.b32.xlu0 %v4605_v25, %s4354_s8 }
 0x446   : > { %v4165_v10 = vpop.eup %4164 }
 0x447   : > { %2185 = vrot.lane.b32.xlu0 %v4593_v21, %s4354_s8  ;;  %v1198_v1 = vmul.f32 %v4165_v10, %v4795_v13  ;;  %v4167_v13 = vpop.eup %4166  ;;  %s4290_s8 = scalar_lea.vmem %s4289_s29, 2048 }
 0x448   : > { %v1200_v0 = vmul.f32 %v4167_v13, %v4791_v36 }
 0x449   : > { %3780 = vmatprep.mubr.msk.f32.mxu0 %vm713_vm1, %v1198_v1 }
 0x46d   : > { %v1181_v49 = vpop.xlane.xlu1 %1180 }
 0x46e   : > { %4168 = vrcp.f32 %v1181_v49 }
 0x46f   : > { %4170 = vrcp.f32 %v1184_v45 }
 0x471   : > { %v1187_v50 = vpop.xlane.xlu1 %1186 }
 0x472   : > { %4172 = vrcp.f32 %v1187_v50 }
 0x475   : > { %v1190_v51 = vpop.xlane.xlu1 %1189 }
 0x476   : > { %4174 = vrcp.f32 %v1190_v51 }
 0x479   : > { %v1196_v5 = vpop.xlane.xlu1 %1195 }
 0x47a   : > { %4176 = vrcp.f32 %v1196_v5 }
 0x47b   : > { %v4169_v52 = vpop.eup %4168 }
 0x47c   : > { %v4171_v54 = vpop.eup %4170  ;;  %v1202_v28 = vmul.f32 %v4169_v52, %v4817_v53 }
 0x47d   : > { %v1193_v46 = vpop.xlane.xlu0 %1192  ;;  %v1656_v59 = vpop.permute.xlu1 %1655  ;;  %v1204_v33 = vmul.f32 %v4171_v54, %v4799_v38 }
 0x47e   : > { %4178 = vrcp.f32 %v1193_v46 }
 0x47f   : > { %v4173_v31 = vpop.eup %4172 }
 0x480   : > { %v1206_v36 = vmul.f32 %v4173_v31, %v4822_v56 }
 0x481   : > { %v1214_v20 = vpop.permute.xlu0 %1213  ;;  %v1654_v32 = vpop.permute.xlu1 %1653 }
 0x482   : > { %3778 = vmatprep.subr.mxu0 %v1214_v20 }
 0x483   : > { %3779 = vmatpush3.msra.mxu0 %v1214_v20  ;;  %v4175_v4 = vpop.eup %4174 }
 0x484   : > { %3781 = vmatmul.mubr.msk.f32.vlgmr.msra.gmra.mxu0 %vm713_vm1, %v1200_v0  ;;  %3792 = vmatprep.subr.mxu0 %v1366_v29  ;;  %v1208_v6 = vmul.f32 %v4175_v4, %v4826_v57 }
 0x485   : > { %3783 = vmatprep.mubr.msk.f32.mxu0 %vm713_vm1, %v1202_v28  ;;  %3793 = vmatpush3.msra.mxu0 %v1366_v29  ;;  %v1652_v27 = vpop.permute.xlu0 %1651  ;;  %v1650_v17 = vpop.permute.xlu1 %1649 }
 0x486   : > { %3820 = vmatprep.subr.msk.mxu0 %vm575_vm0, %v1656_v59 }
 0x487   : > { %v4177_v53 = vpop.eup %4176 }
 0x488   : > { %3784 = vmatmul.mubr.msk.f32.gmra.mxu0 %vm713_vm1, %v1204_v33  ;;  %v1212_v11 = vmul.f32 %v4177_v53, %v4830_v60 }
 0x489   : > { %3786 = vmatprep.mubr.msk.f32.mxu0 %vm713_vm1, %v1206_v36  ;;  %v1648_v30 = vpop.permute.xlu0 %1647  ;;  %v1646_v41 = vpop.permute.xlu1 %1645 }
 0x48b   : > { %v4179_v7 = vpop.eup %4178 }
 0x48c   : > { %3787 = vmatmul.mubr.msk.f32.gmra.mxu0 %vm713_vm1, %v1208_v6  ;;  %v1210_v8 = vmul.f32 %v4179_v7, %v4834_v2 }
 0x48d   : > { %v1644_v34 = vpop.permute.xlu0 %1643  ;;  %v1642_v62 = vpop.permute.xlu1 %1641 }
 0x48e   : > { %3789 = vmatprep.mubr.msk.f32.mxu0 %vm713_vm1, %v1210_v8 }
 0x490   : > { %3790 = vmatmul.mubr.msk.f32.gmra.mxu0 %vm713_vm1, %v1212_v11 }
 0x491   : > { %v1626_v35 = vpop.permute.xlu0 %1625  ;;  %v1628_v43 = vpop.permute.xlu1 %1627 }
 0x495   : > { %v1630_v55 = vpop.permute.xlu0 %1629  ;;  %v1632_v45 = vpop.permute.xlu1 %1631 }
 0x499   : > { %v1634_v40 = vpop.permute.xlu0 %1633  ;;  %v1636_v47 = vpop.permute.xlu1 %1635 }
 0x49d   : > { %v1638_v44 = vpop.permute.xlu0 %1637  ;;  %v1640_v1 = vpop.permute.xlu1 %1639 }
 0x4a1   : > { %v2204_v9 = vpop.permute.xlu0 %2203  ;;  %v2202_v49 = vpop.permute.xlu1 %2201 }
 0x4a5   : > { %v2200_v10 = vpop.permute.xlu0 %2199  ;;  %v2198_v51 = vpop.permute.xlu1 %2197 }
 0x4a9   : > { %v2196_v48 = vpop.permute.xlu0 %2195  ;;  %v2194_v46 = vpop.permute.xlu1 %2193 }
 0x4ad   : > { %v2192_v50 = vpop.permute.xlu0 %2191  ;;  %v2190_v13 = vpop.permute.xlu1 %2189 }
 0x4b1   : > { %v2174_v5 = vpop.permute.xlu0 %2173  ;;  %v2176_v52 = vpop.permute.xlu1 %2175 }
 0x4b5   : > { %v2178_v20 = vpop.permute.xlu0 %2177  ;;  %v2180_v29 = vpop.permute.xlu1 %2179 }
 0x4b9   : > { %v2182_v0 = vpop.permute.xlu0 %2181  ;;  %v2184_v54 = vpop.permute.xlu1 %2183 }
 0x4bd   : > { %v2186_v28 = vpop.permute.xlu0 %2185  ;;  %v2188_v31 = vpop.permute.xlu1 %2187 }
 0x4ea   : > { %v3726_v38 = vpop.f32.mrf.mxu0 }
 0x4ec   : > { %v916_v56 = vpop.f32.mrf.mxu0 }
 0x4ed   : > { %3808 = vmatprep.mubr.msk.f32.mxu1 %vm575_vm0, %v916_v56 }
 0x4ee   : > { %3809 = vmatmul.mubr.msk.f32.vlgmr.msra.gmra.mxu1 %vm575_vm0, %v3726_v38 }
 0x4f3   : > { %v3729_v18 = vpop.f32.mrf.mxu0 }
 0x4f5   : > { %v926_v14 = vpop.f32.mrf.mxu0 }
 0x4f6   : > { %3811 = vmatprep.mubr.msk.f32.mxu1 %vm575_vm0, %v926_v14 }
 0x4f7   : > { %v3732_v57 = vpop.f32.mrf.mxu0  ;;  %3812 = vmatmul.mubr.msk.f32.gmra.mxu1 %vm575_vm0, %v3729_v18 }
 0x4f9   : > { %v936_v2 = vpop.f32.mrf.mxu0 }
 0x4fa   : > { %3814 = vmatprep.mubr.msk.f32.mxu1 %vm575_vm0, %v936_v2 }
 0x4fb   : > { %v3735_v16 = vpop.f32.mrf.mxu0  ;;  %3815 = vmatmul.mubr.msk.f32.gmra.mxu1 %vm575_vm0, %v3732_v57 }
 0x4fd   : > { %v946_v60 = vpop.f32.mrf.mxu0 }
 0x4fe   : > { %3817 = vmatprep.mubr.msk.f32.mxu1 %vm575_vm0, %v946_v60 }
 0x4ff   : > { %3818 = vmatmul.mubr.msk.f32.gmra.mxu1 %vm575_vm0, %v3735_v16 }
 0x544   : > { %v3782_v37 = vpop.f32.mrf.mxu0 }
 0x546   : > { %v1327_v58 = vpop.f32.mrf.mxu0 }
 0x547   : > { %3794 = vmatprep.mubr.msk.f32.mxu0 %vm575_vm0, %v1327_v58 }
 0x548   : > { %v3785_v3 = vpop.f32.mrf.mxu0  ;;  %3795 = vmatmul.mubr.msk.f32.vlgmr.msra.gmra.mxu0 %vm575_vm0, %v3782_v37 }
 0x549   : > { %3821 = vmatpush3.xpose.msk.msra.mxu0 %vm575_vm0, %v1656_v59 }
 0x54a   : > { %3822 = vmatprep.subr.msk.mxu0 %vm575_vm0, %v1654_v32  ;;  %v1337_v15 = vpop.f32.mrf.mxu0 }
 0x54b   : > { %3797 = vmatprep.mubr.msk.f32.mxu0 %vm575_vm0, %v1337_v15 }
 0x54c   : > { %v3788_v39 = vpop.f32.mrf.mxu0  ;;  %3798 = vmatmul.mubr.msk.f32.gmra.mxu0 %vm575_vm0, %v3785_v3 }
 0x54d   : > { %3823 = vmatpush3.xpose.msk.msra.mxu0 %vm575_vm0, %v1654_v32 }
 0x54e   : > { %3824 = vmatprep.subr.msk.mxu0 %vm575_vm0, %v1652_v27  ;;  %v1347_v61 = vpop.f32.mrf.mxu0 }
 0x54f   : > { %3800 = vmatprep.mubr.msk.f32.mxu0 %vm575_vm0, %v1347_v61 }
 0x550   : > { %v3791_v42 = vpop.f32.mrf.mxu0  ;;  %3801 = vmatmul.mubr.msk.f32.gmra.mxu0 %vm575_vm0, %v3788_v39 }
 0x551   : > { %3825 = vmatpush3.xpose.msk.msra.mxu0 %vm575_vm0, %v1652_v27 }
 0x552   : > { %3826 = vmatprep.subr.msk.mxu0 %vm575_vm0, %v1650_v17  ;;  %v1357_v63 = vpop.f32.mrf.mxu0 }
 0x553   : > { %3803 = vmatprep.mubr.msk.f32.mxu0 %vm575_vm0, %v1357_v63 }
 0x554   : > { %3804 = vmatmul.mubr.msk.f32.gmra.mxu0 %vm575_vm0, %v3791_v42 }
 0x555   : > { %3827 = vmatpush3.xpose.msk.msra.mxu0 %vm575_vm0, %v1650_v17  ;;  %3836 = vmatprep.mubr.msk.f32.mxu0 %vm575_vm0, %v1626_v35 }
 0x556   : > { %3828 = vmatprep.subr.msk.mxu0 %vm575_vm0, %v1648_v30 }
 0x559   : > { %3829 = vmatpush3.xpose.msk.msra.mxu0 %vm575_vm0, %v1648_v30 }
 0x55a   : > { %3830 = vmatprep.subr.msk.mxu0 %vm575_vm0, %v1646_v41 }
 0x55d   : > { %3831 = vmatpush3.xpose.msk.msra.mxu0 %vm575_vm0, %v1646_v41 }
 0x55e   : > { %3832 = vmatprep.subr.msk.mxu0 %vm575_vm0, %v1644_v34 }
 0x561   : > { %3833 = vmatpush3.xpose.msk.msra.mxu0 %vm575_vm0, %v1644_v34 }
 0x562   : > { %3834 = vmatprep.subr.msk.mxu0 %vm575_vm0, %v1642_v62 }
 0x565   : > { %3835 = vmatpush3.xpose.msk.msra.mxu0 %vm575_vm0, %v1642_v62 }
 0x566   : > { %3890 = vmatprep.subr.msk.mxu0 %vm575_vm0, %v2204_v9 }
 0x568   : > { %3837 = vmatmul.mubr.msk.f32.vlgmr.msra.gmra.mxu0 %vm575_vm0, %v1628_v43 }
 0x569   : > { %3839 = vmatprep.mubr.msk.f32.mxu0 %vm575_vm0, %v1630_v55  ;;  %3891 = vmatpush3.xpose.msk.msra.mxu0 %vm575_vm0, %v2204_v9 }
 0x56a   : > { %3892 = vmatprep.subr.msk.mxu0 %vm575_vm0, %v2202_v49 }
 0x56c   : > { %3840 = vmatmul.mubr.msk.f32.gmra.mxu0 %vm575_vm0, %v1632_v45 }
 0x56d   : > { %3842 = vmatprep.mubr.msk.f32.mxu0 %vm575_vm0, %v1634_v40  ;;  %3893 = vmatpush3.xpose.msk.msra.mxu0 %vm575_vm0, %v2202_v49 }
 0x56e   : > { %3894 = vmatprep.subr.msk.mxu0 %vm575_vm0, %v2200_v10 }
 0x570   : > { %3843 = vmatmul.mubr.msk.f32.gmra.mxu0 %vm575_vm0, %v1636_v47 }
 0x571   : > { %3845 = vmatprep.mubr.msk.f32.mxu0 %vm575_vm0, %v1638_v44  ;;  %3895 = vmatpush3.xpose.msk.msra.mxu0 %vm575_vm0, %v2200_v10 }
 0x572   : > { %3896 = vmatprep.subr.msk.mxu0 %vm575_vm0, %v2198_v51 }
 0x574   : > { %3846 = vmatmul.mubr.msk.f32.gmra.mxu0 %vm575_vm0, %v1640_v1 }
 0x575   : > { %3897 = vmatpush3.xpose.msk.msra.mxu0 %vm575_vm0, %v2198_v51  ;;  %3906 = vmatprep.mubr.msk.f32.mxu0 %vm575_vm0, %v2174_v5 }
 0x576   : > { %3898 = vmatprep.subr.msk.mxu0 %vm575_vm0, %v2196_v48 }
 0x579   : > { %3899 = vmatpush3.xpose.msk.msra.mxu0 %vm575_vm0, %v2196_v48 }
 0x57a   : > { %3900 = vmatprep.subr.msk.mxu0 %vm575_vm0, %v2194_v46 }
 0x57d   : > { %3901 = vmatpush3.xpose.msk.msra.mxu0 %vm575_vm0, %v2194_v46 }
 0x57e   : > { %3902 = vmatprep.subr.msk.mxu0 %vm575_vm0, %v2192_v50 }
 0x581   : > { %3903 = vmatpush3.xpose.msk.msra.mxu0 %vm575_vm0, %v2192_v50 }
 0x582   : > { %3904 = vmatprep.subr.msk.mxu0 %vm575_vm0, %v2190_v13 }
 0x585   : > { %3905 = vmatpush3.xpose.msk.msra.mxu0 %vm575_vm0, %v2190_v13 }
 0x588   : > { %3907 = vmatmul.mubr.msk.f32.vlgmr.msra.gmra.mxu0 %vm575_vm0, %v2176_v52 }
 0x589   : > { %3909 = vmatprep.mubr.msk.f32.mxu0 %vm575_vm0, %v2178_v20 }
 0x58c   : > { %3910 = vmatmul.mubr.msk.f32.gmra.mxu0 %vm575_vm0, %v2180_v29 }
 0x58d   : > { %3912 = vmatprep.mubr.msk.f32.mxu0 %vm575_vm0, %v2182_v0 }
 0x590   : > { %3913 = vmatmul.mubr.msk.f32.gmra.mxu0 %vm575_vm0, %v2184_v54 }
 0x591   : > { %3915 = vmatprep.mubr.msk.f32.mxu0 %vm575_vm0, %v2186_v28 }
 0x594   : > { %3916 = vmatmul.mubr.msk.f32.gmra.mxu0 %vm575_vm0, %v2188_v31 }
 0x608   : > { %v4989_v59 = vpop.f32.mrf.mxu0 }
 0x60a   : > { %v4991_v33 = vpop.f32.mrf.mxu0 }
 0x60c   : > { %v4993_v4 = vpop.f32.mrf.mxu0 }
 0x60e   : > { %v4995_v36 = vpop.f32.mrf.mxu0 }
 0x610   : > { %v4997_v53 = vpop.f32.mrf.mxu0 }
 0x612   : > { %v4999_v6 = vpop.f32.mrf.mxu0 }
 0x614   : > { %v5001_v7 = vpop.f32.mrf.mxu0 }
 0x616   : > { %v5003_v8 = vpop.f32.mrf.mxu0 }
 0x628   : > { %v3838_v11 = vpop.f32.mrf.mxu0 }
 0x629   : > { %v1797_v38 = vsel %vm713_vm1, %v3838_v11, -inf }
 0x62a   : > { %1798 = vmax.xlane.f32.xlu1 %v1797_v38  ;;  %v1755_v56 = vpop.f32.mrf.mxu0 }
 0x62b   : > { %v1794_v18 = vsel %vm713_vm1, %v1755_v56, -inf }
 0x62c   : > { %1795 = vmax.xlane.f32.xlu0 %v1794_v18  ;;  %v3841_v14 = vpop.f32.mrf.mxu0 }
 0x62d   : > { %v1803_v2 = vsel %vm713_vm1, %v3841_v14, -inf }
 0x62e   : > { %v1765_v57 = vpop.f32.mrf.mxu0 }
 0x62f   : > { %v1800_v30 = vsel %vm713_vm1, %v1765_v57, -inf }
 0x630   : > { %1804 = vmax.xlane.f32.xlu0 %v1803_v2  ;;  %v3844_v16 = vpop.f32.mrf.mxu0 }
 0x631   : > { %v1809_v60 = vsel %vm713_vm1, %v3844_v16, -inf }
 0x632   : > { %1810 = vmax.xlane.f32.xlu1 %v1809_v60  ;;  %v1775_v27 = vpop.f32.mrf.mxu0 }
 0x633   : > { %v1806_v17 = vsel %vm713_vm1, %v1775_v27, -inf }
 0x634   : > { %1801 = vmax.xlane.f32.xlu0 %v1800_v30  ;;  %v3847_v32 = vpop.f32.mrf.mxu0 }
 0x635   : > { %v1815_v34 = vsel %vm713_vm1, %v3847_v32, -inf }
 0x636   : > { %1816 = vmax.xlane.f32.xlu1 %v1815_v34  ;;  %v1785_v35 = vpop.f32.mrf.mxu0 }
 0x637   : > { %v1812_v37 = vsel %vm713_vm1, %v1785_v35, -inf }
 0x638   : > { %1807 = vmax.xlane.f32.xlu0 %v1806_v17 }
 0x63c   : > { %1813 = vmax.xlane.f32.xlu0 %v1812_v37 }
 0x647   : > { %1894 = vrot.lane.b32.xlu1 %v4593_v21, %s4355_s16 }
 0x64b   : > { %1892 = vrot.lane.b32.xlu1 %v4599_v23, %s4355_s16 }
 0x64f   : > { %1890 = vrot.lane.b32.xlu1 %v4605_v25, %s4355_s16 }
 0x652   : > { %1896 = vrot.lane.b32.xlu0 %v4591_v19, %s4355_s16 }
 0x653   : > { %1886 = vrot.lane.b32.xlu1 %v4609_v26, %s4355_s16 }
 0x656   : > { %1888 = vrot.lane.b32.xlu0 %v4596_v22, %s4355_s16 }
 0x6b3   : > { %v1799_v41 = vpop.xlane.xlu1 %1798 }
 0x6b4   : > { %v1819_v58 = vsub.f32 %v3838_v11, %v1799_v41 }
 0x6b5   : > { %v1796_v3 = vpop.xlane.xlu0 %1795 }
 0x6b6   : > { %v1828_v55 = vmul.f32 1.442695, %v1819_v58  ;;  %v1818_v15 = vsub.f32 %v1755_v56, %v1796_v3 }
 0x6b8   : > { %4180 = vpow2.f32 %v1828_v55  ;;  %v1826_v62 = vmul.f32 1.442695, %v1818_v15 }
 0x6b9   : > { %v1805_v39 = vpop.xlane.xlu0 %1804 }
 0x6ba   : > { %4182 = vpow2.f32 %v1826_v62  ;;  %v1821_v61 = vsub.f32 %v3841_v14, %v1805_v39 }
 0x6bb   : > { %v1811_v40 = vpop.xlane.xlu1 %1810 }
 0x6bc   : > { %v1832_v42 = vmul.f32 1.442695, %v1821_v61  ;;  %v1823_v43 = vsub.f32 %v3844_v16, %v1811_v40 }
 0x6bd   : > { %v1802_v63 = vpop.xlane.xlu0 %1801 }
 0x6be   : > { %4184 = vpow2.f32 %v1832_v42  ;;  %v1836_v44 = vmul.f32 1.442695, %v1823_v43  ;;  %v1820_v45 = vsub.f32 %v1765_v57, %v1802_v63 }
 0x6bf   : > { %v1817_v9 = vpop.xlane.xlu1 %1816 }
 0x6c0   : > { %4186 = vpow2.f32 %v1836_v44  ;;  %v1830_v47 = vmul.f32 1.442695, %v1820_v45  ;;  %v1825_v10 = vsub.f32 %v3847_v32, %v1817_v9 }
 0x6c1   : > { %v1808_v1 = vpop.xlane.xlu0 %1807 }
 0x6c2   : > { %4188 = vpow2.f32 %v1830_v47  ;;  %v1840_v48 = vmul.f32 1.442695, %v1825_v10  ;;  %v1822_v49 = vsub.f32 %v1775_v27, %v1808_v1 }
 0x6c3   : > { %v1895_v50 = vpop.permute.xlu1 %1894 }
 0x6c4   : > { %v1834_v51 = vmul.f32 1.442695, %v1822_v49  ;;  %4190 = vpow2.f32 %v1840_v48 }
 0x6c5   : > { %v5025_v5 = vpop.eup %4180  ;;  %v1814_v46 = vpop.xlane.xlu0 %1813 }
 0x6c6   : > { %4192 = vpow2.f32 %v1834_v51  ;;  %v1824_v13 = vsub.f32 %v1785_v35, %v1814_v46  ;;  %v1845_v52 = vsel %vm713_vm1, %v5025_v5, 0.0  ;;  %v5061_v35 = vpop.f32.mrf.mxu0  ;;  %v2035_v46 = vld [vmem:[%s5506_s4 + $0x10] sm:$0xff] }
 0x6c7   : > { %v5029_v20 = vpop.eup %4182  ;;  %1846 = vadd.xlane.f32.xlu1 %v1845_v52  ;;  %v1893_v0 = vpop.permute.xlu1 %1892  ;;  %v2345_v55 = vsel %vm713_vm1, %v5061_v35, -inf }
 0x6c8   : > { %v1838_v29 = vmul.f32 1.442695, %v1824_v13  ;;  %v1842_v54 = vsel %vm713_vm1, %v5029_v20, 0.0  ;;  %v5063_v37 = vpop.f32.mrf.mxu0 }
 0x6c9   : > { %1843 = vadd.xlane.f32.xlu0 %v1842_v54  ;;  %v1897_v28 = vpop.permute.xlu0 %1896  ;;  %v2342_v62 = vsel %vm713_vm1, %v5063_v37, -inf }
 0x6ca   : > { %4194 = vpow2.f32 %v1838_v29  ;;  %3848 = vmatprep.subr.mxu1 %v1897_v28  ;;  %v5065_v41 = vpop.f32.mrf.mxu0 }
 0x6cb   : > { %v5033_v31 = vpop.eup %4184  ;;  %3849 = vmatpush3.msra.mxu1 %v1897_v28  ;;  %v1891_v56 = vpop.permute.xlu1 %1890  ;;  %v2351_v43 = vsel %vm713_vm1, %v5065_v41, -inf }
 0x6cc   : > { %3850 = vmatprep.subr.mxu1 %v1895_v50  ;;  %v1851_v11 = vsel %vm713_vm1, %v5033_v31, 0.0  ;;  %v5067_v58 = vpop.f32.mrf.mxu0 }
 0x6cd   : > { %v5037_v38 = vpop.eup %4186  ;;  %1852 = vadd.xlane.f32.xlu1 %v1851_v11  ;;  %3851 = vmatpush3.msra.mxu1 %v1895_v50  ;;  %v1889_v16 = vpop.permute.xlu0 %1888  ;;  %v2348_v40 = vsel %vm713_vm1, %v5067_v58, -inf }
 0x6ce   : > { %3852 = vmatprep.subr.mxu1 %v1893_v0  ;;  %v1857_v57 = vsel %vm713_vm1, %v5037_v38, 0.0  ;;  %v5069_v3 = vpop.f32.mrf.mxu0 }
 0x6cf   : > { %v5039_v18 = vpop.eup %4188  ;;  %3853 = vmatpush3.msra.mxu1 %v1893_v0  ;;  %v1887_v27 = vpop.permute.xlu1 %1886  ;;  %v2357_v39 = vsel %vm713_vm1, %v5069_v3, -inf }
 0x6d0   : > { %3854 = vmatprep.subr.mxu1 %v1891_v56  ;;  %v1848_v14 = vsel %vm713_vm1, %v5039_v18, 0.0  ;;  %v5073_v15 = vpop.f32.mrf.mxu0 }
 0x6d1   : > { %1849 = vadd.xlane.f32.xlu0 %v1848_v14  ;;  %1858 = vadd.xlane.f32.xlu1 %v1857_v57  ;;  %v5045_v2 = vpop.eup %4190  ;;  %v2354_v63 = vsel %vm713_vm1, %v5073_v15, -inf }
 0x6d2   : > { %3855 = vmatpush3.msra.mxu1 %v1891_v56  ;;  %v1863_v32 = vsel %vm713_vm1, %v5045_v2, 0.0  ;;  %v5079_v61 = vpop.f32.mrf.mxu0 }
 0x6d3   : > { %v5047_v60 = vpop.eup %4192  ;;  %3856 = vmatprep.subr.mxu1 %v1889_v16  ;;  %v2363_v42 = vsel %vm713_vm1, %v5079_v61, -inf }
 0x6d4   : > { %3857 = vmatpush3.msra.mxu1 %v1889_v16  ;;  %v1854_v30 = vsel %vm713_vm1, %v5047_v60, 0.0  ;;  %v5089_v44 = vpop.f32.mrf.mxu0 }
 0x6d5   : > { %3858 = vmatprep.subr.mxu1 %v1887_v27  ;;  %1855 = vadd.xlane.f32.xlu0 %v1854_v30  ;;  %v2360_v45 = vsel %vm713_vm1, %v5089_v44, -inf }
 0x6d6   : > { %1864 = vadd.xlane.f32.xlu1 %v1863_v32  ;;  %3859 = vmatpush3.msra.mxu1 %v1887_v27 }
 0x6d7   : > { %v5053_v34 = vpop.eup %4194 }
 0x6d8   : > { %v1860_v17 = vsel %vm713_vm1, %v5053_v34, 0.0 }
 0x6d9   : > { %1861 = vadd.xlane.f32.xlu0 %v1860_v17 }
 0x6e7   : > { %1882 = vrot.lane.b32.xlu1 %v4587_v12, %s4355_s16 }
 0x6ef   : > { %1884 = vrot.lane.b32.xlu0 %v4602_v24, %s4355_s16  ;;  %s3399_s16 = sshll.u32 %s4421_s28, 10  ;;  %s5462_s28 = scalar_lea.sflag [#allocation3], %s270_s9 }
 0x6f0   : > { %s5453_s21 = scalar_lea.hbm %s5509_s7, %s3399_s16 }
 0x70b   : > { %2346 = vmax.xlane.f32.xlu1 %v2345_v55 }
 0x70e   : > { %2343 = vmax.xlane.f32.xlu0 %v2342_v62 }
 0x70f   : > { %2358 = vmax.xlane.f32.xlu1 %v2357_v39 }
 0x712   : > { %2349 = vmax.xlane.f32.xlu0 %v2348_v40 }
 0x713   : > { %2364 = vmax.xlane.f32.xlu1 %v2363_v42 }
 0x716   : > { %2352 = vmax.xlane.f32.xlu0 %v2351_v43 }
 0x71a   : > { %2355 = vmax.xlane.f32.xlu0 %v2354_v63 }
 0x71e   : > { %2361 = vmax.xlane.f32.xlu0 %v2360_v45 }
 0x724   : > { %2442 = vrot.lane.b32.xlu1 %v4593_v21, %s4356_s18 }
 0x728   : > { %2440 = vrot.lane.b32.xlu1 %v4599_v23, %s4356_s18 }
 0x72c   : > { %2438 = vrot.lane.b32.xlu1 %v4605_v25, %s4356_s18 }
 0x730   : > { %2434 = vrot.lane.b32.xlu1 %v4609_v26, %s4356_s18 }
 0x734   : > { %2444 = vrot.lane.b32.xlu0 %v4591_v19, %s4356_s18 }
 0x738   : > { %2436 = vrot.lane.b32.xlu0 %v4596_v22, %s4356_s18 }
 0x750   : > { %v1847_v9 = vpop.xlane.xlu1 %1846 }
 0x752   : > { %v1844_v47 = vpop.xlane.xlu0 %1843 }
 0x753   : > { %4196 = vrcp.f32 %v1844_v47 }
 0x754   : > { %4198 = vrcp.f32 %v1847_v9 }
 0x756   : > { %v1853_v10 = vpop.xlane.xlu1 %1852 }
 0x75a   : > { %v1850_v21 = vpop.xlane.xlu0 %1849  ;;  %v1859_v23 = vpop.xlane.xlu1 %1858 }
 0x75b   : > { %4200 = vrcp.f32 %v1850_v21 }
 0x75c   : > { %4202 = vrcp.f32 %v1853_v10 }
 0x75e   : > { %v1856_v1 = vpop.xlane.xlu0 %1855 }
 0x75f   : > { %4204 = vrcp.f32 %v1856_v1  ;;  %v1865_v48 = vpop.xlane.xlu1 %1864 }
 0x760   : > { %v4197_v25 = vpop.eup %4196  ;;  %4206 = vrcp.f32 %v1859_v23 }
 0x761   : > { %v1867_v26 = vmul.f32 %v4197_v25, %v5029_v20  ;;  %v4199_v22 = vpop.eup %4198 }
 0x762   : > { %v1862_v19 = vpop.xlane.xlu0 %1861  ;;  %v1869_v13 = vmul.f32 %v4199_v22, %v5025_v5 }
 0x763   : > { %4208 = vrcp.f32 %v1862_v19  ;;  %3864 = vmatprep.mubr.msk.f32.mxu1 %vm713_vm1, %v1867_v26  ;;  %v1883_v51 = vpop.permute.xlu1 %1882 }
 0x764   : > { %4210 = vrcp.f32 %v1865_v48 }
 0x766   : > { %v1885_v49 = vpop.permute.xlu0 %1884 }
 0x767   : > { %3860 = vmatprep.subr.mxu1 %v1885_v49 }
 0x768   : > { %v4201_v50 = vpop.eup %4200  ;;  %3861 = vmatpush3.msra.mxu1 %v1885_v49 }
 0x769   : > { %3862 = vmatprep.subr.mxu1 %v1883_v51  ;;  %v1871_v52 = vmul.f32 %v4201_v50, %v5039_v18  ;;  %v4203_v20 = vpop.eup %4202 }
 0x76a   : > { %3863 = vmatpush3.msra.mxu1 %v1883_v51  ;;  %v1873_v0 = vmul.f32 %v4203_v20, %v5033_v31 }
 0x76b   : > { %3865 = vmatmul.mubr.msk.f32.vlgmr.msra.gmra.mxu1 %vm713_vm1, %v1869_v13  ;;  %3876 = vmatprep.subr.mxu1 %v2035_v46 }
 0x76c   : > { %v4205_v29 = vpop.eup %4204  ;;  %3867 = vmatprep.mubr.msk.f32.mxu1 %vm713_vm1, %v1871_v52  ;;  %3877 = vmatpush3.msra.mxu1 %v2035_v46  ;;  %v5168_v46 = vpop.f32.mrf.mxu1 }
 0x76d   : > { %v1875_v54 = vmul.f32 %v4205_v29, %v5047_v60  ;;  %v4207_v28 = vpop.eup %4206 }
 0x76e   : > { %v1877_v11 = vmul.f32 %v4207_v28, %v5037_v38  ;;  %v5170_v13 = vpop.f32.mrf.mxu1 }
 0x76f   : > { %3868 = vmatmul.mubr.msk.f32.gmra.mxu1 %vm713_vm1, %v1873_v0 }
 0x770   : > { %v4209_v5 = vpop.eup %4208  ;;  %3870 = vmatprep.mubr.msk.f32.mxu1 %vm713_vm1, %v1875_v54  ;;  %v5172_v52 = vpop.f32.mrf.mxu1 }
 0x771   : > { %v1879_v56 = vmul.f32 %v4209_v5, %v5053_v34  ;;  %v4211_v18 = vpop.eup %4210 }
 0x772   : > { %v1881_v14 = vmul.f32 %v4211_v18, %v5045_v2  ;;  %v5174_v20 = vpop.f32.mrf.mxu1 }
 0x773   : > { %3871 = vmatmul.mubr.msk.f32.gmra.mxu1 %vm713_vm1, %v1877_v11 }
 0x774   : > { %3873 = vmatprep.mubr.msk.f32.mxu1 %vm713_vm1, %v1879_v56  ;;  %v5176_v29 = vpop.f32.mrf.mxu1 }
 0x776   : > { %v5178_v0 = vpop.f32.mrf.mxu1 }
 0x777   : > { %3874 = vmatmul.mubr.msk.f32.gmra.mxu1 %vm713_vm1, %v1881_v14 }
 0x778   : > { %v5180_v28 = vpop.f32.mrf.mxu1 }
 0x794   : > { %v2347_v31 = vpop.xlane.xlu1 %2346 }
 0x795   : > { %v2367_v57 = vsub.f32 %v5061_v35, %v2347_v31 }
 0x797   : > { %v2376_v16 = vmul.f32 1.442695, %v2367_v57  ;;  %v2344_v60 = vpop.xlane.xlu0 %2343 }
 0x798   : > { %v2366_v27 = vsub.f32 %v5063_v37, %v2344_v60  ;;  %v2359_v38 = vpop.xlane.xlu1 %2358 }
 0x799   : > { %4212 = vpow2.f32 %v2376_v16  ;;  %v2371_v17 = vsub.f32 %v5069_v3, %v2359_v38 }
 0x79a   : > { %v2374_v30 = vmul.f32 1.442695, %v2366_v27 }
 0x79b   : > { %v2350_v32 = vpop.xlane.xlu0 %2349  ;;  %v2384_v35 = vmul.f32 1.442695, %v2371_v17 }
 0x79c   : > { %4214 = vpow2.f32 %v2374_v30  ;;  %v2368_v34 = vsub.f32 %v5067_v58, %v2350_v32  ;;  %v2365_v2 = vpop.xlane.xlu1 %2364 }
 0x79d   : > { %v2373_v40 = vsub.f32 %v5079_v61, %v2365_v2 }
 0x79e   : > { %v2378_v55 = vmul.f32 1.442695, %v2368_v34 }
 0x79f   : > { %v2353_v62 = vpop.xlane.xlu0 %2352  ;;  %v2388_v58 = vmul.f32 1.442695, %v2373_v40 }
 0x7a0   : > { %4216 = vpow2.f32 %v2378_v55  ;;  %v2369_v39 = vsub.f32 %v5065_v41, %v2353_v62  ;;  %v2443_v54 = vpop.permute.xlu1 %2442 }
 0x7a2   : > { %v2380_v42 = vmul.f32 1.442695, %v2369_v39 }
 0x7a3   : > { %v2356_v37 = vpop.xlane.xlu0 %2355 }
 0x7a4   : > { %4218 = vpow2.f32 %v2380_v42  ;;  %v2370_v43 = vsub.f32 %v5073_v15, %v2356_v37  ;;  %v2441_v5 = vpop.permute.xlu1 %2440 }
 0x7a5   : > { %4220 = vpow2.f32 %v2384_v35 }
 0x7a6   : > { %v5131_v63 = vpop.eup %4212  ;;  %v2382_v45 = vmul.f32 1.442695, %v2370_v43 }
 0x7a7   : > { %v2362_v3 = vpop.xlane.xlu0 %2361  ;;  %v2393_v9 = vsel %vm713_vm1, %v5131_v63, 0.0 }
 0x7a8   : > { %4222 = vpow2.f32 %v2382_v45  ;;  %v2372_v41 = vsub.f32 %v5089_v44, %v2362_v3  ;;  %2394 = vadd.xlane.f32.xlu1 %v2393_v9  ;;  %v2439_v56 = vpop.permute.xlu1 %2438 }
 0x7a9   : > { %v5136_v47 = vpop.eup %4214  ;;  %4224 = vpow2.f32 %v2388_v58 }
 0x7aa   : > { %v2386_v61 = vmul.f32 1.442695, %v2372_v41  ;;  %v2390_v15 = vsel %vm713_vm1, %v5136_v47, 0.0 }
 0x7ab   : > { %2391 = vadd.xlane.f32.xlu0 %v2390_v15  ;;  %v2445_v10 = vpop.permute.xlu0 %2444 }
 0x7ac   : > { %4226 = vpow2.f32 %v2386_v61  ;;  %3918 = vmatprep.subr.mxu1 %v2445_v10  ;;  %v2435_v16 = vpop.permute.xlu1 %2434 }
 0x7ad   : > { %v5140_v21 = vpop.eup %4216 }
 0x7ae   : > { %v2396_v23 = vsel %vm713_vm1, %v5140_v21, 0.0 }
 0x7af   : > { %2397 = vadd.xlane.f32.xlu0 %v2396_v23  ;;  %v2437_v14 = vpop.permute.xlu0 %2436 }
 0x7b1   : > { %v5144_v1 = vpop.eup %4218 }
 0x7b2   : > { %v2399_v44 = vsel %vm713_vm1, %v5144_v1, 0.0  ;;  %v5148_v25 = vpop.eup %4220 }
 0x7b3   : > { %2400 = vadd.xlane.f32.xlu1 %v2399_v44  ;;  %v2405_v19 = vsel %vm713_vm1, %v5148_v25, 0.0 }
 0x7b5   : > { %v5150_v26 = vpop.eup %4222 }
 0x7b6   : > { %v2402_v48 = vsel %vm713_vm1, %v5150_v26, 0.0  ;;  %v5156_v22 = vpop.eup %4224 }
 0x7b7   : > { %2403 = vadd.xlane.f32.xlu0 %v2402_v48  ;;  %2406 = vadd.xlane.f32.xlu1 %v2405_v19  ;;  %v2411_v51 = vsel %vm713_vm1, %v5156_v22, 0.0  ;;  %v1587_v48 = vadd.f32 %v5170_v13, %v4991_v33  ;;  %v1607_v33 = vadd.f32 %v5178_v0, %v4999_v6 }
 0x7b9   : > { %v5158_v49 = vpop.eup %4226 }
 0x7ba   : > { %v2408_v50 = vsel %vm713_vm1, %v5158_v49, 0.0 }
 0x7bb   : > { %2409 = vadd.xlane.f32.xlu0 %v2408_v50  ;;  %2412 = vadd.xlane.f32.xlu1 %v2411_v51 }
 0x7cc   : > { %2430 = vrot.lane.b32.xlu1 %v4587_v12, %s4356_s18  ;;  %v5182_v12 = vpop.f32.mrf.mxu1 }
 0x7d1   : > { %2432 = vrot.lane.b32.xlu0 %v4602_v24, %s4356_s18 }
 0x82b   : > { %v3866_v11 = vpop.f32.mrf.mxu1 }
 0x82d   : > { %v1996_v24 = vpop.f32.mrf.mxu1 }
 0x82e   : > { %3878 = vmatprep.mubr.msk.f32.mxu1 %vm575_vm0, %v1996_v24  ;;  %v1612_v24 = vadd.f32 %v5176_v29, %v4997_v53 }
 0x82f   : > { %v3869_v18 = vpop.f32.mrf.mxu1  ;;  %3879 = vmatmul.mubr.msk.f32.vlgmr.msra.gmra.mxu1 %vm575_vm0, %v3866_v11 }
 0x830   : > { %3919 = vmatpush3.msra.mxu1 %v2445_v10 }
 0x831   : > { %3920 = vmatprep.subr.mxu1 %v2443_v54  ;;  %v2006_v31 = vpop.f32.mrf.mxu1  ;;  %v2395_v30 = vpop.xlane.xlu1 %2394 }
 0x832   : > { %3921 = vmatpush3.msra.mxu1 %v2443_v54  ;;  %3881 = vmatprep.mubr.msk.f32.mxu1 %vm575_vm0, %v2006_v31  ;;  %v1597_v54 = vadd.f32 %v5174_v20, %v4995_v36  ;;  %v1617_v36 = vadd.f32 %v5182_v12, %v5003_v8  ;;  %v5240_v12 = vld [vmem:[%s5503_s1 + $0x2] ss:$0 sm:$0xff] }
 0x833   : > { %3922 = vmatprep.subr.mxu1 %v2441_v5  ;;  %v3872_v57 = vpop.f32.mrf.mxu1  ;;  %3882 = vmatmul.mubr.msk.f32.gmra.mxu1 %vm575_vm0, %v3869_v18 }
 0x834   : > { %3923 = vmatpush3.msra.mxu1 %v2441_v5  ;;  %v2392_v60 = vpop.xlane.xlu0 %2391 }
 0x835   : > { %4228 = vrcp.f32 %v2392_v60  ;;  %3924 = vmatprep.subr.mxu1 %v2439_v56  ;;  %v2016_v27 = vpop.f32.mrf.mxu1 }
 0x836   : > { %3925 = vmatpush3.msra.mxu1 %v2439_v56  ;;  %3884 = vmatprep.mubr.msk.f32.mxu1 %vm575_vm0, %v2016_v27  ;;  %4230 = vrcp.f32 %v2395_v30 }
 0x837   : > { %3926 = vmatprep.subr.mxu1 %v2437_v14  ;;  %v3875_v38 = vpop.f32.mrf.mxu1  ;;  %3885 = vmatmul.mubr.msk.f32.gmra.mxu1 %vm575_vm0, %v3872_v57 }
 0x838   : > { %3927 = vmatpush3.msra.mxu1 %v2437_v14  ;;  %v2398_v32 = vpop.xlane.xlu0 %2397 }
 0x839   : > { %3928 = vmatprep.subr.mxu1 %v2435_v16  ;;  %v2026_v34 = vpop.f32.mrf.mxu1  ;;  %4232 = vrcp.f32 %v2398_v32 }
 0x83a   : > { %3929 = vmatpush3.msra.mxu1 %v2435_v16  ;;  %3887 = vmatprep.mubr.msk.f32.mxu1 %vm575_vm0, %v2026_v34  ;;  %v4276_v34 = vld [vmem:[%s4452_s17 + $0x8] sm:$0xff] }
 0x83b   : > { %3888 = vmatmul.mubr.msk.f32.gmra.mxu1 %vm575_vm0, %v3875_v38 }
 0x83c   : > { %v2401_v17 = vpop.xlane.xlu1 %2400 }
 0x83d   : > { %4234 = vrcp.f32 %v2401_v17 }
 0x840   : > { %v2404_v55 = vpop.xlane.xlu0 %2403  ;;  %v2407_v2 = vpop.xlane.xlu1 %2406 }
 0x841   : > { %4236 = vrcp.f32 %v2404_v55 }
 0x842   : > { %v4229_v62 = vpop.eup %4228  ;;  %4238 = vrcp.f32 %v2407_v2 }
 0x843   : > { %v2415_v39 = vmul.f32 %v4229_v62, %v5136_v47  ;;  %v4231_v42 = vpop.eup %4230 }
 0x844   : > { %v2410_v35 = vpop.xlane.xlu0 %2409  ;;  %v2413_v40 = vpop.xlane.xlu1 %2412  ;;  %v2417_v45 = vmul.f32 %v4231_v42, %v5131_v63 }
 0x845   : > { %4240 = vrcp.f32 %v2410_v35  ;;  %3934 = vmatprep.mubr.msk.f32.mxu1 %vm713_vm1, %v2415_v39  ;;  %v4277_v39 = vld [vmem:[%s4452_s17] sm:$0xff] }
 0x846   : > { %4242 = vrcp.f32 %v2413_v40  ;;  %v4233_v43 = vpop.eup %4232 }
 0x847   : > { %v2419_v9 = vmul.f32 %v4233_v43, %v5140_v21 }
 0x848   : > { %v2433_v37 = vpop.permute.xlu0 %2432  ;;  %v2431_v58 = vpop.permute.xlu1 %2430 }
 0x849   : > { %3930 = vmatprep.subr.mxu1 %v2433_v37 }
 0x84a   : > { %3931 = vmatpush3.msra.mxu1 %v2433_v37  ;;  %v4235_v3 = vpop.eup %4234  ;;  %v4278_v37 = vld [vmem:[%s4452_s17 + $0x18] sm:$0xff] }
 0x84b   : > { %3932 = vmatprep.subr.mxu1 %v2431_v58  ;;  %v2421_v47 = vmul.f32 %v4235_v3, %v5144_v1  ;;  %v2583_v1 = vld [vmem:[%s5506_s4 + $0x18] sm:$0xff] }
 0x84c   : > { %3933 = vmatpush3.msra.mxu1 %v2431_v58 }
 0x84d   : > { %3935 = vmatmul.mubr.msk.f32.vlgmr.msra.gmra.mxu1 %vm713_vm1, %v2417_v45  ;;  %3946 = vmatprep.subr.mxu1 %v2583_v1 }
 0x84e   : > { %v4237_v41 = vpop.eup %4236  ;;  %3937 = vmatprep.mubr.msk.f32.mxu1 %vm713_vm1, %v2419_v9  ;;  %3947 = vmatpush3.msra.mxu1 %v2583_v1 }
 0x84f   : > { %v2423_v61 = vmul.f32 %v4237_v41, %v5150_v26  ;;  %v4239_v15 = vpop.eup %4238 }
 0x850   : > { %v2425_v63 = vmul.f32 %v4239_v15, %v5148_v25  ;;  %v1592_v25 = vadd.f32 %v5168_v46, %v4989_v59 }
 0x851   : > { %3938 = vmatmul.mubr.msk.f32.gmra.mxu1 %vm713_vm1, %v2421_v47 }
 0x852   : > { %v4241_v10 = vpop.eup %4240  ;;  %3940 = vmatprep.mubr.msk.f32.mxu1 %vm713_vm1, %v2423_v61 }
 0x853   : > { %v2427_v23 = vmul.f32 %v4241_v10, %v5158_v49  ;;  %v4243_v21 = vpop.eup %4242 }
 0x854   : > { %v2429_v44 = vmul.f32 %v4243_v21, %v5156_v22  ;;  %v1602_v22 = vadd.f32 %v5172_v52, %v4993_v4  ;;  %v1622_v4 = vadd.f32 %v5180_v28, %v5001_v7 }
 0x855   : > { %3941 = vmatmul.mubr.msk.f32.gmra.mxu1 %vm713_vm1, %v2425_v63  ;;  %v4279_v63 = vld [vmem:[%s4452_s17 + $0x28] sm:$0xff] }
 0x856   : > { %3943 = vmatprep.mubr.msk.f32.mxu1 %vm713_vm1, %v2427_v23 }
 0x859   : > { %3944 = vmatmul.mubr.msk.f32.gmra.mxu1 %vm713_vm1, %v2429_v44  ;;  %v4280_v44 = vld [vmem:[%s4452_s17 + $0x10] sm:$0xff] }
 0x8ef   : > { %v3880_v26 = vpop.f32.mrf.mxu1 }
 0x8f0   : > { %v2166_v19 = vadd.f32 %v3880_v26, %v1592_v25 }
 0x8f1   : > { %v2126_v49 = vpop.f32.mrf.mxu1 }
 0x8f2   : > { %v2165_v50 = vadd.f32 %v2126_v49, %v1587_v48 }
 0x8f3   : > { %v3883_v51 = vpop.f32.mrf.mxu1 }
 0x8f4   : > { %v2168_v5 = vadd.f32 %v3883_v51, %v1602_v22  ;;  %v2883_v51 = vld [vmem:[%s5507_s5 + $0x70] sm:$0xff] }
 0x8f5   : > { %v2136_v11 = vpop.f32.mrf.mxu1 }
 0x8f6   : > { %v2167_v59 = vadd.f32 %v2136_v11, %v1597_v54  ;;  %v4281_v54 = vld [vmem:[%s4452_s17 + $0x38] sm:$0xff]  ;;  %v2882_v11 = vld [vmem:[%s5507_s5 + $0x68] sm:$0xff] }
 0x8f7   : > { %v3886_v46 = vpop.f32.mrf.mxu1 }
 0x8f8   : > { %v2170_v13 = vadd.f32 %v3886_v46, %v1612_v24  ;;  %v4282_v24 = vld [vmem:[%s4452_s17 + $0x20] sm:$0xff] }
 0x8f9   : > { %v2146_v56 = vpop.f32.mrf.mxu1 }
 0x8fa   : > { %v2169_v52 = vadd.f32 %v2146_v56, %v1607_v33  ;;  %v2881_v33 = vld [vmem:[%s5507_s5 + $0x60] sm:$0xff]  ;;  %v2880_v56 = vld [vmem:[%s5507_s5 + $0x58] sm:$0xff] }
 0x8fb   : > { %v3889_v18 = vpop.f32.mrf.mxu1 }
 0x8fc   : > { %v2172_v20 = vadd.f32 %v3889_v18, %v1622_v4  ;;  %v2879_v18 = vld [vmem:[%s5507_s5 + $0x50] sm:$0xff] }
 0x8fd   : > { %v2156_v14 = vpop.f32.mrf.mxu1 }
 0x8fe   : > { %v5227_v31 = vadd.f32 %v2156_v14, %v1617_v36  ;;  %v2878_v36 = vld [vmem:[%s5507_s5 + $0x48] sm:$0xff] }
 0x90d   : > { %v3936_v53 = vpop.f32.mrf.mxu1 }
 0x90f   : > { %v2544_v29 = vpop.f32.mrf.mxu1 }
 0x910   : > { %3948 = vmatprep.mubr.msk.f32.mxu1 %vm575_vm0, %v2544_v29 }
 0x911   : > { %v3939_v57 = vpop.f32.mrf.mxu1  ;;  %3949 = vmatmul.mubr.msk.f32.vlgmr.msra.gmra.mxu1 %vm575_vm0, %v3936_v53  ;;  %v2876_v53 = vld [vmem:[%s5507_s5 + $0x38] sm:$0xff] }
 0x913   : > { %v2554_v6 = vpop.f32.mrf.mxu1 }
 0x914   : > { %3951 = vmatprep.mubr.msk.f32.mxu1 %vm575_vm0, %v2554_v6  ;;  %v2874_v6 = vld [vmem:[%s5507_s5 + $0x28] sm:$0xff] }
 0x915   : > { %v3942_v7 = vpop.f32.mrf.mxu1  ;;  %3952 = vmatmul.mubr.msk.f32.gmra.mxu1 %vm575_vm0, %v3939_v57  ;;  %v2875_v57 = vld [vmem:[%s5507_s5 + $0x30] sm:$0xff] }
 0x917   : > { %v2564_v0 = vpop.f32.mrf.mxu1 }
 0x918   : > { %3954 = vmatprep.mubr.msk.f32.mxu1 %vm575_vm0, %v2564_v0  ;;  %v2872_v0 = vld [vmem:[%s5507_s5 + $0x18] sm:$0xff] }
 0x919   : > { %v3945_v8 = vpop.f32.mrf.mxu1  ;;  %3955 = vmatmul.mubr.msk.f32.gmra.mxu1 %vm575_vm0, %v3942_v7  ;;  %v2873_v7 = vld [vmem:[%s5507_s5 + $0x20] sm:$0xff] }
 0x91b   : > { %v2574_v28 = vpop.f32.mrf.mxu1 }
 0x91c   : > { %3957 = vmatprep.mubr.msk.f32.mxu1 %vm575_vm0, %v2574_v28  ;;  %v2870_v28 = vld [vmem:[%s5507_s5 + $0x8] sm:$0xff] }
 0x91d   : > { %3958 = vmatmul.mubr.msk.f32.gmra.mxu1 %vm575_vm0, %v3945_v8  ;;  %v2871_v8 = vld [vmem:[%s5507_s5 + $0x10] sm:$0xff] }
 0x9d1   : > { %v3950_v16 = vpop.f32.mrf.mxu1 }
 0x9d2   : > { %v2714_v60 = vadd.f32 %v3950_v16, %v2166_v19  ;;  %v2884_v19 = vld [vmem:[%s5507_s5 + $0x78] sm:$0xff] }
 0x9d3   : > { %v2674_v27 = vpop.f32.mrf.mxu1  ;;  %3960 = vmatprep.subr.mxu0 %v2884_v19  ;;  %v3049_v16 = vld [vmem:[%s5508_s6 + $0x78] sm:$0xff] }
 0x9d4   : > { %v2726_v38 = vadd.f32 %v5240_v12, %v2714_v60  ;;  %v2713_v30 = vadd.f32 %v2674_v27, %v2165_v50  ;;  %3961 = vmatpush3.msra.mxu0 %v2884_v19  ;;  %v3048_v60 = vld [vmem:[%s5508_s6 + $0x70] sm:$0xff]  ;;  %4004 = vmatprep.subr.mxu1 %v3049_v16  ;;  %v3047_v27 = vld [vmem:[%s5508_s6 + $0x68] sm:$0xff] }
 0x9d5   : > { %v3953_v32 = vpop.f32.mrf.mxu1  ;;  %3962 = vmatprep.subr.mxu0 %v2883_v51  ;;  %4005 = vmatpush3.msra.mxu1 %v3049_v16 }
 0x9d6   : > { %v5244_v17 = vadd.f32 %v4276_v34, %v2726_v38  ;;  %v2725_v55 = vadd.f32 %v5240_v12, %v2713_v30  ;;  %v2716_v2 = vadd.f32 %v3953_v32, %v2168_v5  ;;  %3963 = vmatpush3.msra.mxu0 %v2883_v51  ;;  %4006 = vmatprep.subr.mxu1 %v3048_v60 }
 0x9d7   : > { %v2684_v62 = vpop.f32.mrf.mxu1  ;;  %3964 = vmatprep.subr.mxu0 %v2882_v11  ;;  %4007 = vmatpush3.msra.mxu1 %v3048_v60 }
 0x9d8   : > { %v5248_v35 = vadd.f32 %v4277_v39, %v2725_v55  ;;  %v2728_v40 = vadd.f32 %v5240_v12, %v2716_v2  ;;  %2743 = vadd.xlane.f32.xlu1 %v5244_v17  ;;  %v2715_v3 = vadd.f32 %v2684_v62, %v2167_v59  ;;  %v2766_v9 = vmul.f32 %v5244_v17, %v5244_v17 }
 0x9d9   : > { %v3956_v42 = vpop.f32.mrf.mxu1  ;;  %3965 = vmatpush3.msra.mxu0 %v2882_v11  ;;  %4008 = vmatprep.subr.mxu1 %v3047_v27 }
 0x9da   : > { %v5253_v43 = vadd.f32 %v4278_v37, %v2728_v40  ;;  %v2718_v58 = vadd.f32 %v3956_v42, %v2170_v13  ;;  %2741 = vadd.xlane.f32.xlu0 %v5248_v35  ;;  %v2727_v15 = vadd.f32 %v5240_v12, %v2715_v3  ;;  %v2765_v10 = vmul.f32 %v5248_v35, %v5248_v35 }
 0x9db   : > { %v2694_v45 = vpop.f32.mrf.mxu1  ;;  %3966 = vmatprep.subr.mxu0 %v2881_v33  ;;  %4009 = vmatpush3.msra.mxu1 %v3047_v27 }
 0x9dc   : > { %2747 = vadd.xlane.f32.xlu1 %v5253_v43  ;;  %v2730_v41 = vadd.f32 %v5240_v12, %v2718_v58  ;;  %v2768_v47 = vmul.f32 %v5253_v43, %v5253_v43  ;;  %v5269_v1 = vadd.f32 %v4280_v44, %v2727_v15  ;;  %v2717_v25 = vadd.f32 %v2694_v45, %v2169_v52 }
 0x9dd   : > { %v3959_v61 = vpop.f32.mrf.mxu1  ;;  %3967 = vmatpush3.msra.mxu0 %v2881_v33 }
 0x9de   : > { %2775 = vadd.xlane.f32.xlu0 %v2766_v9  ;;  %v5266_v23 = vadd.f32 %v4279_v63, %v2730_v41  ;;  %v2720_v21 = vadd.f32 %v3959_v61, %v2172_v20  ;;  %v2729_v49 = vadd.f32 %v5240_v12, %v2717_v25  ;;  %v2767_v22 = vmul.f32 %v5269_v1, %v5269_v1  ;;  %v4283_v20 = vld [vmem:[%s4452_s17 + $0x30] sm:$0xff]  ;;  %s5434_s17 = scalar_lea.vmem [#allocation2], %s3255_s15 }
 0x9df   : > { %v2704_v50 = vpop.f32.mrf.mxu1  ;;  %3968 = vmatprep.subr.mxu0 %v2880_v56  ;;  %s3189_s18 = sshll.u32 %s5434_s17, 4  ;;  %s5455_s18 = int_to_ptr.vmem [resolvable:$true] %s3189_s18 }
 0x9e0   : > { %2779 = vadd.xlane.f32.xlu1 %v2768_v47  ;;  %v2732_v26 = vadd.f32 %v5240_v12, %v2720_v21  ;;  %v2770_v48 = vmul.f32 %v5266_v23, %v5266_v23  ;;  %v5292_v59 = vadd.f32 %v4282_v24, %v2729_v49  ;;  %v2719_v46 = vadd.f32 %v2704_v50, %v5227_v31  ;;  %v2877_v31 = vld [vmem:[%s5507_s5 + $0x40] sm:$0xff]  ;;  %s4284_s22 = scalar_lea.vmem %s5455_s18, 1024  ;;  %p4291_p0 = scmp.lt.s32.totalorder %s5455_s18, %s4289_s29 }
 0x9e1   : > { %3969 = vmatpush3.msra.mxu0 %v2880_v56  ;;  %p4285_p11 = scmp.ne.s32.totalorder %s5455_s18, %s4284_s22  ;;  %p4292_p1 = scmp.lt.s32.totalorder %s4290_s8, %s4284_s22 }
 0x9e2   : > { %2773 = vadd.xlane.f32.xlu0 %v2765_v10  ;;  %v5286_v5 = vadd.f32 %v4281_v54, %v2732_v26  ;;  %v2731_v4 = vadd.f32 %v5240_v12, %v2719_v46  ;;  %v2769_v52 = vmul.f32 %v5292_v59, %v5292_v59  ;;  %3970 = vmatprep.subr.mxu0 %v2879_v18  ;;  %v2869_v12 = vld [vmem:[%s5507_s5] sm:$0xff] }
 0x9e3   : > { %3971 = vmatpush3.msra.mxu0 %v2879_v18  ;;  %p4286_p12 = pnand %p4285_p11, %p4438_p5  ;;  %p4293_p2 = por %p4292_p1, %p4291_p0 }
 0x9e4   : > { %2751 = vadd.xlane.f32.xlu1 %v5266_v23  ;;  %v2772_v13 = vmul.f32 %v5286_v5, %v5286_v5  ;;  %v5315_v14 = vadd.f32 %v4283_v20, %v2731_v4  ;;  %3972 = vmatprep.subr.mxu0 %v2878_v36 }
 0x9e5   : > { %3973 = vmatpush3.msra.mxu0 %v2878_v36  ;;  %p4287_p13 = pneg %p4286_p12 }
 0x9e6   : > { %2745 = vadd.xlane.f32.xlu0 %v5269_v1  ;;  %3974 = vmatprep.subr.mxu0 %v2877_v31  ;;  %v2771_v29 = vmul.f32 %v5315_v14, %v5315_v14 }
 0x9e7   : > { %3975 = vmatpush3.msra.mxu0 %v2877_v31  ;;  %p4294_p3 = pnand %p4293_p2, %p4287_p13 }
 0x9e8   : > { %2783 = vadd.xlane.f32.xlu1 %v2770_v48  ;;  %3976 = vmatprep.subr.mxu0 %v2876_v53 }
 0x9e9   : > { %3977 = vmatpush3.msra.mxu0 %v2876_v53 }
 0x9ea   : > { %2777 = vadd.xlane.f32.xlu0 %v2767_v22  ;;  %3978 = vmatprep.subr.mxu0 %v2875_v57 }
 0x9eb   : > { %3979 = vmatpush3.msra.mxu0 %v2875_v57 }
 0x9ec   : > { %2755 = vadd.xlane.f32.xlu1 %v5286_v5  ;;  %3980 = vmatprep.subr.mxu0 %v2874_v6 }
 0x9ed   : > { %3981 = vmatpush3.msra.mxu0 %v2874_v6 }
 0x9ee   : > { %2749 = vadd.xlane.f32.xlu0 %v5292_v59  ;;  %3982 = vmatprep.subr.mxu0 %v2873_v7 }
 0x9ef   : > { %3983 = vmatpush3.msra.mxu0 %v2873_v7 }
 0x9f0   : > { %2787 = vadd.xlane.f32.xlu1 %v2772_v13  ;;  %3984 = vmatprep.subr.mxu0 %v2872_v0 }
 0x9f1   : > { %3985 = vmatpush3.msra.mxu0 %v2872_v0 }
 0x9f2   : > { %2781 = vadd.xlane.f32.xlu0 %v2769_v52  ;;  %3986 = vmatprep.subr.mxu0 %v2871_v8 }
 0x9f3   : > { %3987 = vmatpush3.msra.mxu0 %v2871_v8 }
 0x9f4   : > { %3988 = vmatprep.subr.mxu0 %v2870_v28 }
 0x9f5   : > { %3989 = vmatpush3.msra.mxu0 %v2870_v28  ;;  %v3390_v28 = vld [vmem:[%s5503_s1 + $0x3] ss:$0 sm:$0xff] }
 0x9f6   : > { %2753 = vadd.xlane.f32.xlu0 %v5315_v14  ;;  %3990 = vmatprep.subr.mxu0 %v2869_v12 }
 0x9f7   : > { %3991 = vmatpush3.msra.mxu0 %v2869_v12 }
 0x9fa   : > { %2785 = vadd.xlane.f32.xlu0 %v2771_v29 }
 0xa61   : > { %v2744_v38 = vpop.xlane.xlu1 %2743 }
 0xa62   : > { %v2758_v32 = vmul.f32 0.03125, %v2744_v38 }
 0xa63   : > { %v2742_v30 = vpop.xlane.xlu0 %2741 }
 0xa64   : > { %v2798_v62 = vmul.f32 %v2758_v32, %v2758_v32  ;;  %v2757_v39 = vmul.f32 0.03125, %v2742_v30  ;;  %v2814_v20 = vsub.f32 %v5244_v17, %v2758_v32 }
 0xa65   : > { %v2748_v34 = vpop.xlane.xlu1 %2747 }
 0xa66   : > { %v5356_v55 = vmul.f32 0.03125, %v2748_v34  ;;  %v2797_v9 = vmul.f32 %v2757_v39, %v2757_v39  ;;  %v2813_v0 = vsub.f32 %v5248_v35, %v2757_v39 }
 0xa67   : > { %v2776_v2 = vpop.xlane.xlu0 %2775 }
 0xa68   : > { %v2790_v40 = vmul.f32 0.03125, %v2776_v2  ;;  %v2800_v45 = vmul.f32 %v5356_v55, %v5356_v55  ;;  %v3391_v2 = vld [vmem:[%s5503_s1 + $0x4] ss:$0 sm:$0xff]  ;;  %v2816_v39 = vsub.f32 %v5253_v43, %v5356_v55 }
 0xa69   : > { %v2780_v42 = vpop.xlane.xlu1 %2779 }
 0xa6a   : > { %v2806_v37 = vsub.f32 %v2790_v40, %v2798_v62  ;;  %v2792_v58 = vmul.f32 0.03125, %v2780_v42 }
 0xa6b   : > { %v2774_v3 = vpop.xlane.xlu0 %2773 }
 0xa6c   : > { %v2822_v41 = vadd.f32 1e-05, %v2806_v37  ;;  %v2789_v47 = vmul.f32 0.03125, %v2774_v3  ;;  %v2808_v61 = vsub.f32 %v2792_v58, %v2800_v45 }
 0xa6d   : > { %v2752_v15 = vpop.xlane.xlu1 %2751 }
 0xa6e   : > { %4244 = vrsqrt.f32 %v2822_v41  ;;  %v2805_v10 = vsub.f32 %v2789_v47, %v2797_v9  ;;  %v5360_v63 = vmul.f32 0.03125, %v2752_v15  ;;  %v2824_v25 = vadd.f32 1e-05, %v2808_v61 }
 0xa6f   : > { %v2746_v21 = vpop.xlane.xlu0 %2745 }
 0xa70   : > { %v2821_v44 = vadd.f32 1e-05, %v2805_v10  ;;  %v2759_v26 = vmul.f32 0.03125, %v2746_v21  ;;  %v2802_v49 = vmul.f32 %v5360_v63, %v5360_v63  ;;  %v2818_v55 = vsub.f32 %v5266_v23, %v5360_v63 }
 0xa71   : > { %v2784_v48 = vpop.xlane.xlu1 %2783 }
 0xa72   : > { %4246 = vrsqrt.f32 %v2821_v44  ;;  %v2794_v19 = vmul.f32 0.03125, %v2784_v48  ;;  %v2799_v50 = vmul.f32 %v2759_v26, %v2759_v26  ;;  %v2815_v9 = vsub.f32 %v5269_v1, %v2759_v26 }
 0xa73   : > { %v2778_v22 = vpop.xlane.xlu0 %2777  ;;  %4248 = vrsqrt.f32 %v2824_v25 }
 0xa74   : > { %v2791_v51 = vmul.f32 0.03125, %v2778_v22  ;;  %v2810_v54 = vsub.f32 %v2794_v19, %v2802_v49 }
 0xa75   : > { %v2756_v11 = vpop.xlane.xlu1 %2755 }
 0xa76   : > { %v2807_v24 = vsub.f32 %v2791_v51, %v2799_v50  ;;  %v5364_v46 = vmul.f32 0.03125, %v2756_v11  ;;  %v2826_v56 = vadd.f32 1e-05, %v2810_v54 }
 0xa77   : > { %v2750_v33 = vpop.xlane.xlu0 %2749 }
 0xa78   : > { %v2823_v13 = vadd.f32 1e-05, %v2807_v24  ;;  %v2761_v4 = vmul.f32 0.03125, %v2750_v33  ;;  %v2804_v31 = vmul.f32 %v5364_v46, %v5364_v46  ;;  %v2820_v11 = vsub.f32 %v5286_v5, %v5364_v46  ;;  %v3045_v46 = vld [vmem:[%s5508_s6 + $0x58] sm:$0xff] }
 0xa79   : > { %v2788_v52 = vpop.xlane.xlu1 %2787 }
 0xa7a   : > { %4250 = vrsqrt.f32 %v2823_v13  ;;  %v2796_v18 = vmul.f32 0.03125, %v2788_v52  ;;  %v2801_v29 = vmul.f32 %v2761_v4, %v2761_v4  ;;  %v2817_v49 = vsub.f32 %v5292_v59, %v2761_v4 }
 0xa7b   : > { %v4245_v36 = vpop.eup %4244  ;;  %v2782_v53 = vpop.xlane.xlu0 %2781  ;;  %4252 = vrsqrt.f32 %v2826_v56 }
 0xa7c   : > { %v2793_v57 = vmul.f32 0.03125, %v2782_v53  ;;  %v2812_v6 = vsub.f32 %v2796_v18, %v2804_v31  ;;  %v2838_v7 = vmul.f32 %v4245_v36, %v2814_v20  ;;  %v3046_v31 = vld [vmem:[%s5508_s6 + $0x60] sm:$0xff]  ;;  %v3044_v53 = vld [vmem:[%s5508_s6 + $0x50] sm:$0xff] }
 0xa7d   : > { %4010 = vmatprep.subr.mxu1 %v3046_v31 }
 0xa7e   : > { %v2809_v8 = vsub.f32 %v2793_v57, %v2801_v29  ;;  %v2828_v30 = vadd.f32 1e-05, %v2812_v6  ;;  %v2850_v32 = vmul.f32 %v3390_v28, %v2838_v7  ;;  %4011 = vmatpush3.msra.mxu1 %v3046_v31  ;;  %v3043_v29 = vld [vmem:[%s5508_s6 + $0x48] sm:$0xff]  ;;  %v3042_v57 = vld [vmem:[%s5508_s6 + $0x40] sm:$0xff]  ;;  %v3041_v6 = vld [vmem:[%s5508_s6 + $0x38] sm:$0xff] }
 0xa7f   : > { %v4247_v12 = vpop.eup %4246  ;;  %v2754_v16 = vpop.xlane.xlu0 %2753  ;;  %4012 = vmatprep.subr.mxu1 %v3045_v46  ;;  %v3040_v7 = vld [vmem:[%s5508_s6 + $0x30] sm:$0xff] }
 0xa80   : > { %v2825_v60 = vadd.f32 1e-05, %v2809_v8  ;;  %v2763_v27 = vmul.f32 0.03125, %v2754_v16  ;;  %v2837_v38 = vmul.f32 %v4247_v12, %v2813_v0  ;;  %v4249_v34 = vpop.eup %4248  ;;  %v2862_v45 = vadd.f32 %v3391_v2, %v2850_v32  ;;  %4013 = vmatpush3.msra.mxu1 %v3045_v46  ;;  %v3039_v0 = vld [vmem:[%s5508_s6 + $0x28] sm:$0xff]  ;;  %v3038_v8 = vld [vmem:[%s5508_s6 + $0x20] sm:$0xff]  ;;  %v3036_v12 = vld [vmem:[%s5508_s6 + $0x10] sm:$0xff] }
 0xa81   : > { %v2840_v3 = vmul.f32 %v4249_v34, %v2816_v39  ;;  %4014 = vmatprep.subr.mxu1 %v3044_v53  ;;  %v3035_v16 = vld [vmem:[%s5508_s6 + $0x8] sm:$0xff] }
 0xa82   : > { %4254 = vrsqrt.f32 %v2825_v60  ;;  %v2849_v62 = vmul.f32 %v3390_v28, %v2837_v38  ;;  %v2803_v42 = vmul.f32 %v2763_v27, %v2763_v27  ;;  %v2819_v63 = vsub.f32 %v5315_v14, %v2763_v27  ;;  %4015 = vmatpush3.msra.mxu1 %v3044_v53  ;;  %v3034_v60 = vld [vmem:[%s5508_s6] sm:$0xff] }
 0xa83   : > { %v2786_v40 = vpop.xlane.xlu0 %2785  ;;  %4256 = vrsqrt.f32 %v2828_v30  ;;  %v2852_v10 = vmul.f32 %v3390_v28, %v2840_v3  ;;  %4016 = vmatprep.subr.mxu1 %v3043_v29  ;;  %v3392_v27 = vld [vmem:[%s5503_s1 + $0x5] ss:$0 sm:$0xff] }
 0xa84   : > { %v2795_v37 = vmul.f32 0.03125, %v2786_v40  ;;  %v2861_v58 = vadd.f32 %v3391_v2, %v2849_v62  ;;  %4017 = vmatpush3.msra.mxu1 %v3043_v29 }
 0xa85   : > { %v2864_v48 = vadd.f32 %v3391_v2, %v2852_v10  ;;  %4018 = vmatprep.subr.mxu1 %v3042_v57 }
 0xa86   : > { %v2811_v41 = vsub.f32 %v2795_v37, %v2803_v42  ;;  %3992 = vmatprep.mubr.f32.mxu0 %v2861_v58  ;;  %4019 = vmatpush3.msra.mxu1 %v3042_v57 }
 0xa87   : > { %v4251_v47 = vpop.eup %4250  ;;  %3993 = vmatmul.mubr.f32.vlgmr.msra.gmra.mxu0 %v2862_v45  ;;  %4020 = vmatprep.subr.mxu1 %v3041_v6 }
 0xa88   : > { %v2827_v61 = vadd.f32 1e-05, %v2811_v41  ;;  %v2839_v15 = vmul.f32 %v4251_v47, %v2815_v9  ;;  %v4253_v21 = vpop.eup %4252  ;;  %4021 = vmatpush3.msra.mxu1 %v3041_v6 }
 0xa89   : > { %v2842_v19 = vmul.f32 %v4253_v21, %v2818_v55  ;;  %4022 = vmatprep.subr.mxu1 %v3040_v7 }
 0xa8a   : > { %4258 = vrsqrt.f32 %v2827_v61  ;;  %v2851_v44 = vmul.f32 %v3390_v28, %v2839_v15  ;;  %4023 = vmatpush3.msra.mxu1 %v3040_v7 }
 0xa8b   : > { %v2854_v50 = vmul.f32 %v3390_v28, %v2842_v19  ;;  %4024 = vmatprep.subr.mxu1 %v3039_v0 }
 0xa8c   : > { %v2863_v25 = vadd.f32 %v3391_v2, %v2851_v44  ;;  %4025 = vmatpush3.msra.mxu1 %v3039_v0 }
 0xa8d   : > { %v2866_v33 = vadd.f32 %v3391_v2, %v2854_v50  ;;  %4026 = vmatprep.subr.mxu1 %v3038_v8 }
 0xa8e   : > { %3995 = vmatprep.mubr.f32.mxu0 %v2863_v25  ;;  %4027 = vmatpush3.msra.mxu1 %v3038_v8 }
 0xa8f   : > { %v4255_v26 = vpop.eup %4254  ;;  %3996 = vmatmul.mubr.f32.gmra.mxu0 %v2864_v48 }
 0xa90   : > { %v2841_v22 = vmul.f32 %v4255_v26, %v2817_v49  ;;  %v4257_v51 = vpop.eup %4256 }
 0xa91   : > { %v2844_v13 = vmul.f32 %v4257_v51, %v2820_v11 }
 0xa92   : > { %v2853_v54 = vmul.f32 %v3390_v28, %v2841_v22 }
 0xa93   : > { %v2856_v4 = vmul.f32 %v3390_v28, %v2844_v13 }
 0xa94   : > { %v2865_v24 = vadd.f32 %v3391_v2, %v2853_v54 }
 0xa95   : > { %v2868_v20 = vadd.f32 %v3391_v2, %v2856_v4 }
 0xa96   : > { %3998 = vmatprep.mubr.f32.mxu0 %v2865_v24 }
 0xa97   : > { %v4259_v56 = vpop.eup %4258  ;;  %3999 = vmatmul.mubr.f32.gmra.mxu0 %v2866_v33 }
 0xa98   : > { %v2843_v52 = vmul.f32 %v4259_v56, %v2819_v63 }
 0xa9a   : > { %v2855_v18 = vmul.f32 %v3390_v28, %v2843_v52  ;;  %v3037_v28 = vld [vmem:[%s5508_s6 + $0x18] sm:$0xff] }
 0xa9b   : > { %4028 = vmatprep.subr.mxu1 %v3037_v28 }
 0xa9c   : > { %v2867_v36 = vadd.f32 %v3391_v2, %v2855_v18  ;;  %4029 = vmatpush3.msra.mxu1 %v3037_v28 }
 0xa9d   : > { %4030 = vmatprep.subr.mxu1 %v3036_v12 }
 0xa9e   : > { %4001 = vmatprep.mubr.f32.mxu0 %v2867_v36  ;;  %4031 = vmatpush3.msra.mxu1 %v3036_v12 }
 0xa9f   : > { %4002 = vmatmul.mubr.f32.gmra.mxu0 %v2868_v20  ;;  %4032 = vmatprep.subr.mxu1 %v3035_v16 }
 0xaa0   : > { %4033 = vmatpush3.msra.mxu1 %v3035_v16 }
 0xaa1   : > { %4034 = vmatprep.subr.mxu1 %v3034_v60 }
 0xaa2   : > { %4035 = vmatpush3.msra.mxu1 %v3034_v60 }
 0xb47   : > { %v3994_v38 = vpop.f32.mrf.mxu0 }
 0xb48   : > { %v2961_v30 = vadd.f32 %v3994_v38, %v3392_v27  ;;  %v3393_v38 = vld [vmem:[%s5503_s1 + $0x6] ss:$0 sm:$0xff] }
 0xb49   : > { %v2955_v32 = vpop.f32.mrf.mxu0 }
 0xb4a   : > { %v3003_v34 = vmul.f32 0.70710677, %v2961_v30  ;;  %v2956_v2 = vadd.f32 %v3392_v27, %v2955_v32  ;;  %v2995_v48 = vmul.f32 0.5, %v2961_v30 }
 0xb4c   : > { %4260 = verf.f32 %v3003_v34  ;;  %v3002_v62 = vmul.f32 0.70710677, %v2956_v2  ;;  %v2994_v55 = vmul.f32 0.5, %v2956_v2 }
 0xb4e   : > { %4262 = verf.f32 %v3002_v62 }
 0xb4f   : > { %v3997_v39 = vpop.f32.mrf.mxu0 }
 0xb50   : > { %v2971_v40 = vadd.f32 %v3997_v39, %v3392_v27 }
 0xb51   : > { %v2965_v42 = vpop.f32.mrf.mxu0 }
 0xb52   : > { %v3005_v37 = vmul.f32 0.70710677, %v2971_v40  ;;  %v2966_v58 = vadd.f32 %v3392_v27, %v2965_v42  ;;  %v2997_v52 = vmul.f32 0.5, %v2971_v40 }
 0xb54   : > { %4264 = verf.f32 %v3005_v37  ;;  %v3004_v45 = vmul.f32 0.70710677, %v2966_v58  ;;  %v2996_v13 = vmul.f32 0.5, %v2966_v58 }
 0xb56   : > { %4266 = verf.f32 %v3004_v45 }
 0xb57   : > { %v4000_v3 = vpop.f32.mrf.mxu0 }
 0xb58   : > { %v2981_v9 = vadd.f32 %v4000_v3, %v3392_v27 }
 0xb59   : > { %v4261_v41 = vpop.eup %4260  ;;  %v2975_v47 = vpop.f32.mrf.mxu0 }
 0xb5a   : > { %v3007_v61 = vmul.f32 0.70710677, %v2981_v9  ;;  %v2976_v15 = vadd.f32 %v3392_v27, %v2975_v47  ;;  %v3019_v21 = vadd.f32 1.0, %v4261_v41  ;;  %v2999_v29 = vmul.f32 0.5, %v2981_v9 }
 0xb5b   : > { %v4263_v10 = vpop.eup %4262 }
 0xb5c   : > { %4268 = verf.f32 %v3007_v61  ;;  %v3006_v44 = vmul.f32 0.70710677, %v2976_v15  ;;  %v3018_v25 = vadd.f32 1.0, %v4263_v10  ;;  %v3027_v26 = vmul.f32 %v3019_v21, %v2995_v48 }
 0xb5d   : > { %v2998_v46 = vmul.f32 0.5, %v2976_v15 }
 0xb5e   : > { %4270 = verf.f32 %v3006_v44  ;;  %v3026_v49 = vmul.f32 %v3018_v25, %v2994_v55 }
 0xb5f   : > { %v4003_v19 = vpop.f32.mrf.mxu0 }
 0xb60   : > { %v2991_v22 = vadd.f32 %v4003_v19, %v3392_v27  ;;  %4036 = vmatprep.mubr.f32.mxu1 %v3026_v49 }
 0xb61   : > { %v4265_v50 = vpop.eup %4264  ;;  %v2985_v51 = vpop.f32.mrf.mxu0  ;;  %4037 = vmatmul.mubr.f32.vlgmr.msra.gmra.mxu1 %v3027_v26 }
 0xb62   : > { %v3009_v54 = vmul.f32 0.70710677, %v2991_v22  ;;  %v2986_v11 = vadd.f32 %v3392_v27, %v2985_v51  ;;  %v3021_v33 = vadd.f32 1.0, %v4265_v50  ;;  %v3001_v16 = vmul.f32 0.5, %v2991_v22 }
 0xb63   : > { %v4267_v24 = vpop.eup %4266 }
 0xb64   : > { %4272 = verf.f32 %v3009_v54  ;;  %v3008_v63 = vmul.f32 0.70710677, %v2986_v11  ;;  %v3020_v56 = vadd.f32 1.0, %v4267_v24  ;;  %v3029_v18 = vmul.f32 %v3021_v33, %v2997_v52 }
 0xb65   : > { %v3000_v28 = vmul.f32 0.5, %v2986_v11 }
 0xb66   : > { %4274 = verf.f32 %v3008_v63  ;;  %v3028_v4 = vmul.f32 %v3020_v56, %v2996_v13 }
 0xb68   : > { %4039 = vmatprep.mubr.f32.mxu1 %v3028_v4 }
 0xb69   : > { %v4269_v36 = vpop.eup %4268  ;;  %4040 = vmatmul.mubr.f32.gmra.mxu1 %v3029_v18 }
 0xb6a   : > { %v3023_v31 = vadd.f32 1.0, %v4269_v36 }
 0xb6b   : > { %v4271_v20 = vpop.eup %4270 }
 0xb6c   : > { %v3022_v53 = vadd.f32 1.0, %v4271_v20  ;;  %v3031_v6 = vmul.f32 %v3023_v31, %v2999_v29 }
 0xb6e   : > { %v3030_v57 = vmul.f32 %v3022_v53, %v2998_v46 }
 0xb70   : > { %4042 = vmatprep.mubr.f32.mxu1 %v3030_v57 }
 0xb71   : > { %v4273_v7 = vpop.eup %4272  ;;  %4043 = vmatmul.mubr.f32.gmra.mxu1 %v3031_v6 }
 0xb72   : > { %v3025_v8 = vadd.f32 1.0, %v4273_v7 }
 0xb73   : > { %v4275_v0 = vpop.eup %4274 }
 0xb74   : > { %v3024_v12 = vadd.f32 1.0, %v4275_v0  ;;  %v3033_v27 = vmul.f32 %v3025_v8, %v3001_v16 }
 0xb76   : > { %v3032_v60 = vmul.f32 %v3024_v12, %v3000_v28 }
 0xb78   : > { %4045 = vmatprep.mubr.f32.mxu1 %v3032_v60 }
 0xb79   : > { %4046 = vmatmul.mubr.f32.gmra.mxu1 %v3033_v27 }
 0xc21   : > { %v4038_v30 = vpop.f32.mrf.mxu1 }
 0xc22   : > { %v3126_v32 = vadd.f32 %v4038_v30, %v3393_v38 }
 0xc23   : > { %v3120_v34 = vpop.f32.mrf.mxu1 }
 0xc24   : > { %v3160_v2 = vadd.f32 %v3126_v32, %v5244_v17  ;;  %v3121_v62 = vadd.f32 %v3393_v38, %v3120_v34 }
 0xc26   : > { %3168 = vst [vmem:[%s5434_s17 + $0x8] sm:$0xff] %v3160_v2  ;;  %v3159_v39 = vadd.f32 %v3121_v62, %v5248_v35 }
 0xc28   : > { %3167 = vst [vmem:[%s5434_s17] sm:$0xff] %v3159_v39 }
 0xc29   : > { %v4041_v40 = vpop.f32.mrf.mxu1 }
 0xc2a   : > { %v3136_v42 = vadd.f32 %v4041_v40, %v3393_v38 }
 0xc2b   : > { %v3130_v37 = vpop.f32.mrf.mxu1 }
 0xc2c   : > { %v3162_v58 = vadd.f32 %v3136_v42, %v5253_v43  ;;  %v3131_v17 = vadd.f32 %v3393_v38, %v3130_v37 }
 0xc2e   : > { %3170 = vst [vmem:[%s5434_s17 + $0x18] sm:$0xff] %v3162_v58  ;;  %v3161_v45 = vadd.f32 %v3131_v17, %v5269_v1 }
 0xc30   : > { %3169 = vst [vmem:[%s5434_s17 + $0x10] sm:$0xff] %v3161_v45 }
 0xc31   : > { %v4044_v3 = vpop.f32.mrf.mxu1 }
 0xc32   : > { %v3146_v9 = vadd.f32 %v4044_v3, %v3393_v38 }
 0xc33   : > { %v3140_v41 = vpop.f32.mrf.mxu1 }
 0xc34   : > { %v3164_v35 = vadd.f32 %v3146_v9, %v5266_v23  ;;  %v3141_v47 = vadd.f32 %v3393_v38, %v3140_v41 }
 0xc36   : > { %3172 = vst [vmem:[%s5434_s17 + $0x28] sm:$0xff] %v3164_v35  ;;  %v3163_v61 = vadd.f32 %v3141_v47, %v5292_v59 }
 0xc38   : > { %3171 = vst [vmem:[%s5434_s17 + $0x20] sm:$0xff] %v3163_v61 }
 0xc39   : > { %v4047_v43 = vpop.f32.mrf.mxu1 }
 0xc3a   : > { %v3156_v15 = vadd.f32 %v4047_v43, %v3393_v38 }
 0xc3b   : > { %v3150_v1 = vpop.f32.mrf.mxu1 }
 0xc3c   : > { %v3166_v10 = vadd.f32 %v3156_v15, %v5286_v5  ;;  %v3151_v21 = vadd.f32 %v3393_v38, %v3150_v1 }
 0xc3e   : > { %3174 = vst [vmem:[%s5434_s17 + $0x38] sm:$0xff] %v3166_v10  ;;  %v3165_v23 = vadd.f32 %v3151_v21, %v5315_v14 }
 0xc40   : > { %3173 = vst [vmem:[%s5434_s17 + $0x30] sm:$0xff] %v3165_v23 }
 0xc41   : > { %4297 = shalt.err (!%p4294_p3)
}
 0xc42   : > { %s4298_s9 = scalar_lea.hbm %s5453_s21, 1024  ;;  %s4302_s15 = scalar_lea.hbm %s5509_s7, 2048 }
 0xc43   : > { %p4299_p4 = scmp.ne.s32.totalorder %s5453_s21, %s4298_s9  ;;  %p4303_p9 = scmp.lt.s32.totalorder %s5453_s21, %s5509_s7 }
 0xc44   : > { %p4304_p10 = scmp.lt.s32.totalorder %s4302_s15, %s4298_s9 }
 0xc45   : > { %p4300_p7 = pnand %p4299_p4, %p4438_p5 }
 0xc46   : > { %p4305_p11 = por %p4304_p10, %p4303_p9 }
 0xc47   : > { %p4301_p8 = pneg %p4300_p7 }
 0xc49   : > { %p4306_p12 = pnand %p4305_p11, %p4301_p8 }
 0xc4b   : > { %4309 = shalt.err (!%p4306_p12)
}
 0xc4c   : > { %s4358_s19 = smov 128   ;;  %s4359_s20 = smov 8  }
 0xc4d   : > { %4048 = dma.vmem_to_hbm [thread:$0]  (%p4438_p5), %s5455_s18, 1024, %s5453_s21, %s5462_s28, %s4358_s19, %s4358_s19, %s4359_s20  }
 0xc4e PF: > { %p4054_p13 = scmp.ge.s32.totalorder %s4344_s27, 2  ;;  %s3204_s22 = sand.u32 1, %s4332_s24  }
 0xc4f   : > { %s3205_s23 = scalar_lea.sflag [#allocation3], %s3204_s22 }
 0xc50   : > { %p4051_p0 = pnand %p4054_p13, %p4442_p6 }
 0xc52   : > { %p4052_p1 = pneg %p4051_p0 }
 0xc54   : > { %4327 = dma.done.wait (%p4052_p1), %s3205_s23, 1024  }
 0xc55   : > { %4329 = vsyncadd (%p4052_p1), %s3205_s23, 4294966272  ;;  %p17_p2 = scmp.ge.s32.totalorder %s4425_s30, 4   ;;  %s5512_s24 = smov %s4336_s25 }
 0xc56   : > { %s5513_s25 = smov %s4340_s26  ;;  %s5514_s26 = smov %s4436_s10 }
 0xc57   : > { %s5515_s27 = smov %s4425_s30  ;;  %19 = sbr.rel (!%p17_p2) target bundleno = 3 (0x3), region = 83 }
 0xc5c   :  { %3210 = vsyncpa [#allocation3], 1 }
 0xc5d   :  { %3212 = vsyncpa [#allocation3 + $0x1], 1 }

</bundles_post_ra>
